<compile_context>
chip_gen: v5e
topology: v5e:2x2
jax: 0.10.0
libtpu: 0.0.40
codegen_flags: <defaults>
</compile_context>

<pallas_src>
import math

import jax
import jax.numpy as jnp
from jax import lax
from jax.experimental import pallas as pl
from jax.experimental.pallas import tpu as pltpu


_EPS_SQ = 1e-24  # eps^2 for F.normalize's max(||.||, 1e-12) clamp.


# ----------------------------------------------------------------------------
# Hardware-aware sizing helpers.
# ----------------------------------------------------------------------------
def _vmem_capacity_bytes():
    try:
        info = pltpu.get_tpu_info()
        cap = getattr(info, "vmem_capacity_bytes", None)
        if cap:
            return int(cap)
    except Exception:
        pass
    return 64 * 1024 * 1024  # conservative default (v7x physical VMEM)


def _candidate_tiles(C, cap=1024):
    """Class-tile widths: multiples of 128 that divide C, capped for vreg
    pressure in the post-matmul epilogue.  Non-128-multiple C falls back to a
    single full-width tile."""
    if C % 128 != 0:
        return [C]
    return [t for t in range(128, min(C, cap) + 1, 128) if C % t == 0]


def _w_block_spec(tc, D, n_tiles):
    """Streamed W tile; triple-buffered when there are enough tiles to hide
    DMA issue latency behind the tiny per-tile compute."""
    idx = lambda j: (j, 0)
    buffered = getattr(pl, "Buffered", None)
    if n_tiles >= 3 and buffered is not None:
        try:
            return pl.BlockSpec((tc, D), idx, pipeline_mode=buffered(3))
        except TypeError:
            pass
    return pl.BlockSpec((tc, D), idx)


# ----------------------------------------------------------------------------
# Fused single-launch kernel: class-tiled logits + online softmax + in-VMEM
# normalization (pass 2 fused into pass 1).
# ----------------------------------------------------------------------------
def _make_fused_kernel(B, tc, n_tiles):
    scale_const = math.log((B - 1) / math.pi) * math.pi

    def kernel(x_ref, w_ref, out_ref, logits_sc, inv_x_sc, m_sc, l_sc):
        j = pl.program_id(0)

        @pl.when(j == 0)
        def _init():
            x0 = x_ref[...]
            # rsqrt of clamped sum-of-squares == 1 / max(||x||, 1e-12).
            inv_x_sc[...] = lax.rsqrt(
                jnp.maximum(jnp.sum(x0 * x0, axis=1, keepdims=True), _EPS_SQ))
            m_sc[...] = jnp.full_like(m_sc, -jnp.inf)
            l_sc[...] = jnp.zeros_like(l_sc)

        w = w_ref[...]                                               # [tc, D]
        inv_w = lax.rsqrt(
            jnp.maximum(jnp.sum(w * w, axis=1, keepdims=True), _EPS_SQ))

        # cos = x @ W^T (contract last dims; no weight transpose), then a
        # rank-1 rescale by the inverse row norms.
        raw = lax.dot_general(x_ref[...], w,
                              dimension_numbers=(((1,), (1,)), ((), ())),
                              preferred_element_type=jnp.float32)     # [B, tc]
        cos = raw * inv_x_sc[...] * inv_w.T

        # sin = clip(sqrt(1 - cos^2), 1e-6, 1); inner clip guards roundoff.
        sin = jnp.clip(jnp.sqrt(jnp.clip(1.0 - cos * cos, 0.0, None)),
                       1e-6, 1.0)

        cos_mean = jnp.mean(cos, axis=0, keepdims=True)               # [1, tc]
        sin_mean = jnp.mean(sin, axis=0, keepdims=True)               # [1, tc]
        # cos(atan2(y, x)) == x * rsqrt(x^2 + y^2); sin_mean >= 1e-6 so no 0/0.
        cos_theta = cos_mean * lax.rsqrt(
            cos_mean * cos_mean + sin_mean * sin_mean)
        logit = cos * (scale_const * cos_theta)                       # [B, tc]

        # Stage the tile in VMEM (dynamic leading-axis index keeps lane slices
        # static everywhere else).
        logits_sc[j] = logit

        # Online softmax accumulators across class tiles.
        tile_max = jnp.max(logit, axis=1, keepdims=True)              # [B, 1]
        m_new = jnp.maximum(m_sc[...], tile_max)
        l_sc[...] = (l_sc[...] * jnp.exp(m_sc[...] - m_new)
                     + jnp.sum(jnp.exp(logit - m_new), axis=1, keepdims=True))
        m_sc[...] = m_new

        @pl.when(j == n_tiles - 1)
        def _finalize():
            inv_l = pl.reciprocal(l_sc[...])
            m = m_sc[...]
            # Static, lane-aligned chunks -> bounded vreg pressure per chunk.
            for t in range(n_tiles):
                out_ref[:, t * tc:(t + 1) * tc] = (
                    jnp.exp(logits_sc[t] - m) * inv_l)

    return kernel


def _adacos_fused(x, w, tc, vmem_limit):
    B, D = x.shape
    C = w.shape[0]
    n_tiles = C // tc
    return pl.pallas_call(
        _make_fused_kernel(B, tc, n_tiles),
        out_shape=jax.ShapeDtypeStruct((B, C), jnp.float32),
        grid=(n_tiles,),
        in_specs=[
            pl.BlockSpec((B, D), lambda j: (0, 0)),      # x resident
            _w_block_spec(tc, D, n_tiles),               # streamed W tile
        ],
        out_specs=pl.BlockSpec((B, C), lambda j: (0, 0)),  # resident output
        scratch_shapes=[
            pltpu.VMEM((n_tiles, B, tc), jnp.float32),   # staged logits
            pltpu.VMEM((B, 1), jnp.float32),             # 1/||x|| per row
            pltpu.VMEM((B, 1), jnp.float32),             # running max m
            pltpu.VMEM((B, 1), jnp.float32),             # running sum l
        ],
        compiler_params=pltpu.CompilerParams(
            dimension_semantics=("arbitrary",),
            vmem_limit_bytes=vmem_limit),
    )(x, w)


# ----------------------------------------------------------------------------
# Fallback two-pass path (resident [B, C] block does not fit VMEM).
# ----------------------------------------------------------------------------
def _make_logits_kernel(B):
    scale_const = math.log((B - 1) / math.pi) * math.pi

    def kernel(x_ref, w_ref, logits_ref, m_ref, l_ref, inv_x_sc):
        j = pl.program_id(0)

        @pl.when(j == 0)
        def _init():
            x0 = x_ref[...]
            inv_x_sc[...] = lax.rsqrt(
                jnp.maximum(jnp.sum(x0 * x0, axis=1, keepdims=True), _EPS_SQ))
            m_ref[...] = jnp.full_like(m_ref, -jnp.inf)
            l_ref[...] = jnp.zeros_like(l_ref)

        w = w_ref[...]
        inv_w = lax.rsqrt(
            jnp.maximum(jnp.sum(w * w, axis=1, keepdims=True), _EPS_SQ))
        raw = lax.dot_general(x_ref[...], w,
                              dimension_numbers=(((1,), (1,)), ((), ())),
                              preferred_element_type=jnp.float32)
        cos = raw * inv_x_sc[...] * inv_w.T
        sin = jnp.clip(jnp.sqrt(jnp.clip(1.0 - cos * cos, 0.0, None)),
                       1e-6, 1.0)
        cos_mean = jnp.mean(cos, axis=0, keepdims=True)
        sin_mean = jnp.mean(sin, axis=0, keepdims=True)
        cos_theta = cos_mean * lax.rsqrt(
            cos_mean * cos_mean + sin_mean * sin_mean)
        logit = cos * (scale_const * cos_theta)
        logits_ref[...] = logit

        tile_max = jnp.max(logit, axis=1, keepdims=True)
        m_new = jnp.maximum(m_ref[...], tile_max)
        l_ref[...] = (l_ref[...] * jnp.exp(m_ref[...] - m_new)
                      + jnp.sum(jnp.exp(logit - m_new), axis=1, keepdims=True))
        m_ref[...] = m_new

    return kernel


def _softmax_kernel(logits_ref, m_ref, l_ref, out_ref):
    out_ref[...] = (jnp.exp(logits_ref[...] - m_ref[...])
                    * pl.reciprocal(l_ref[...])).astype(out_ref.dtype)


def _adacos_two_pass(x, w, tc, vmem_limit):
    B, D = x.shape
    C = w.shape[0]
    n_tiles = C // tc

    logits, m, l = pl.pallas_call(
        _make_logits_kernel(B),
        out_shape=(jax.ShapeDtypeStruct((B, C), jnp.float32),
                   jax.ShapeDtypeStruct((B, 1), jnp.float32),
                   jax.ShapeDtypeStruct((B, 1), jnp.float32)),
        grid=(n_tiles,),
        in_specs=[pl.BlockSpec((B, D), lambda j: (0, 0)),
                  _w_block_spec(tc, D, n_tiles)],
        out_specs=(pl.BlockSpec((B, tc), lambda j: (0, j)),
                   pl.BlockSpec((B, 1), lambda j: (0, 0)),
                   pl.BlockSpec((B, 1), lambda j: (0, 0))),
        scratch_shapes=[pltpu.VMEM((B, 1), jnp.float32)],
        compiler_params=pltpu.CompilerParams(
            dimension_semantics=("arbitrary",),
            vmem_limit_bytes=vmem_limit),
    )(x, w)

    probs = pl.pallas_call(
        _softmax_kernel,
        out_shape=jax.ShapeDtypeStruct((B, C), jnp.float32),
        grid=(n_tiles,),
        in_specs=[pl.BlockSpec((B, tc), lambda j: (0, j)),
                  pl.BlockSpec((B, 1), lambda j: (0, 0)),
                  pl.BlockSpec((B, 1), lambda j: (0, 0))],
        out_specs=pl.BlockSpec((B, tc), lambda j: (0, j)),
        input_output_aliases={0: 0},   # probs overwrite the logits buffer
        compiler_params=pltpu.CompilerParams(
            dimension_semantics=("parallel",),
            vmem_limit_bytes=vmem_limit),
    )(logits, m, l)
    return probs


# ----------------------------------------------------------------------------
# Public wrapper.
# ----------------------------------------------------------------------------
def adacos_forward(x, w, *, class_tile=None):
    """AdaCos forward: softmax(s * cos) with per-class adaptive scale s.

    Note: B == 1 yields scale_const = log(0) = -inf, same as the PyTorch module.
    """
    B, D = x.shape
    C, D2 = w.shape
    assert D == D2
    x = x.astype(jnp.float32)
    w = w.astype(jnp.float32)

    capacity = _vmem_capacity_bytes()
    budget = int(capacity * 0.6)                       # working-set target
    vmem_limit = min(int(capacity * 0.85), 100 * 1024 * 1024)

    cands = _candidate_tiles(C)
    if class_tile is not None:
        assert C % class_tile == 0
        cands = [class_tile]

    def fused_bytes(tc):
        # resident x (2x), triple-buffered W tile, resident out (2x) +
        # staged-logits scratch, small accumulators.
        return 4 * (2 * B * D + 3 * tc * D + 3 * B * C + 16 * B)

    def two_pass_bytes(tc):
        return 4 * (2 * B * D + 3 * tc * D + 2 * B * tc + 16 * B)

    # Preferred: fully fused single launch (biggest lever at small B).
    fused_ok = [t for t in cands if fused_bytes(t) <= budget and C // t <= 64]
    if fused_ok:
        return _adacos_fused(x, w, max(fused_ok), vmem_limit)

    # Fallback: two-pass online softmax when [B, C] does not fit VMEM.
    two_ok = [t for t in cands if two_pass_bytes(t) <= budget]
    tc = max(two_ok) if two_ok else cands[0]
    return _adacos_two_pass(x, w, tc, vmem_limit)


# ----------------------------------------------------------------------------
# Pure-JAX reference (mirrors the PyTorch module).
# ----------------------------------------------------------------------------
def adacos_reference(x, w):
    eps = 1e-12
    xn = x / jnp.maximum(jnp.linalg.norm(x, axis=1, keepdims=True), eps)
    wn = w / jnp.maximum(jnp.linalg.norm(w, axis=1, keepdims=True), eps)
    cos = xn @ wn.T
    sin = jnp.clip(jnp.sqrt(jnp.clip(1.0 - cos * cos, 0.0, None)), 1e-6, 1.0)
    cos_mean = jnp.mean(cos, axis=0)
    sin_mean = jnp.mean(sin, axis=0)
    theta = jnp.arctan2(sin_mean, cos_mean)
    B = x.shape[0]
    s = math.log((B - 1) / math.pi) * jnp.cos(theta) * math.pi
    logit = cos * s
    return jax.nn.softmax(logit, axis=1)


if __name__ == "__main__":
    # Small shapes consistent with the module: batch=8, features=256, classes=512.
    batch, in_features, out_classes = 8, 256, 512

    key = jax.random.PRNGKey(0)
    kx, kw = jax.random.split(key)

    x = jax.random.normal(kx, (batch, in_features), dtype=jnp.float32)
    # Deterministic xavier_normal_ init: std = sqrt(2 / (fan_in + fan_out)).
    xavier_std = math.sqrt(2.0 / (in_features + out_classes))
    W = xavier_std * jax.random.normal(kw, (out_classes, in_features),
                                       dtype=jnp.float32)

    ref = adacos_reference(x, W)

    # Auto-tiled fused path (single class tile at these shapes).
    out = jax.block_until_ready(adacos_forward(x, W))
    assert out.shape == (batch, out_classes)
    assert jnp.allclose(out, ref, atol=1e-5, rtol=1e-5), "auto-tile mismatch"

    # Forced multi-tile path: exercises the streamed (triple-buffered) W
    # pipeline, the online softmax and the chunked in-VMEM finalize.
    out_tiled = jax.block_until_ready(adacos_forward(x, W, class_tile=128))
    assert jnp.allclose(out_tiled, ref, atol=1e-5, rtol=1e-5), "tiled mismatch"

    print("KERNEL_OK")
</pallas_src>

<mosaic_0001>
module attributes {stable_mosaic.version = 11 : i64} {
  func.func @kernel(%arg0: i32, %arg1: memref<8x256xf32, #tpu.memory_space<vmem>>, %arg2: memref<512x256xf32, #tpu.memory_space<vmem>>, %arg3: memref<8x512xf32, #tpu.memory_space<vmem>>, %arg4: memref<1x8x512xf32, #tpu.memory_space<vmem>>, %arg5: memref<8x1xf32, #tpu.memory_space<vmem>>, %arg6: memref<8x1xf32, #tpu.memory_space<vmem>>, %arg7: memref<8x1xf32, #tpu.memory_space<vmem>>) attributes {dimension_semantics = [#tpu.dimension_semantics<arbitrary>], iteration_bounds = array<i64: 1>, scalar_prefetch = 0 : i64, scratch_operands = 4 : i64, tpu.core_type = #tpu.core_type<tc>, window_params = [{pipeline_mode = #tpu.pipeline_mode<synchronous>, transform_indices = @transform_0, window_bounds = array<i64: 8, 256>}, {transform_indices = @transform_1, window_bounds = array<i64: 512, 256>}, {pipeline_mode = #tpu.pipeline_mode<synchronous>, transform_indices = @transform_2, window_bounds = array<i64: 8, 512>}]} {
    %c0_i32 = arith.constant 0 : i32
    %0 = arith.cmpi eq, %arg0, %c0_i32 : i32
    %1 = arith.extui %0 : i1 to i32
    %c0_i32_0 = arith.constant 0 : i32
    %2 = arith.cmpi ne, %1, %c0_i32_0 : i32
    scf.if %2 {
      %c0_33 = arith.constant 0 : index
      %c0_34 = arith.constant 0 : index
      %69 = vector.load %arg1[%c0_33, %c0_34] : memref<8x256xf32, #tpu.memory_space<vmem>>, vector<8x256xf32>
      %70 = arith.mulf %69, %69 : vector<8x256xf32>
      %cst_35 = arith.constant dense<0.000000e+00> : vector<8xf32>
      %71 = vector.multi_reduction <add>, %70, %cst_35 [1] : vector<8x256xf32> to vector<8xf32>
      %72 = vector.shape_cast %71 : vector<8xf32> to vector<8x1xf32>
      %cst_36 = arith.constant 1.000000e-24 : f32
      %73 = vector.broadcast %cst_36 : f32 to vector<8x1xf32>
      %74 = arith.maximumf %72, %73 : vector<8x1xf32>
      %75 = math.rsqrt %74 : vector<8x1xf32>
      %c0_37 = arith.constant 0 : index
      %c0_38 = arith.constant 0 : index
      %76 = vector.load %arg5[%c0_37, %c0_38] : memref<8x1xf32, #tpu.memory_space<vmem>>, vector<8x1xf32>
      tpu.vector_store %arg5[%c0_37, %c0_38], %75 {strides = array<i32>} : memref<8x1xf32, #tpu.memory_space<vmem>>, vector<8x1xf32>,
      %cst_39 = arith.constant 0xFF800000 : f32
      %77 = vector.broadcast %cst_39 : f32 to vector<8x1xf32>
      %c0_40 = arith.constant 0 : index
      %c0_41 = arith.constant 0 : index
      %78 = vector.load %arg6[%c0_40, %c0_41] : memref<8x1xf32, #tpu.memory_space<vmem>>, vector<8x1xf32>
      tpu.vector_store %arg6[%c0_40, %c0_41], %77 {strides = array<i32>} : memref<8x1xf32, #tpu.memory_space<vmem>>, vector<8x1xf32>,
      %cst_42 = arith.constant 0.000000e+00 : f32
      %79 = vector.broadcast %cst_42 : f32 to vector<8x1xf32>
      %c0_43 = arith.constant 0 : index
      %c0_44 = arith.constant 0 : index
      %80 = vector.load %arg7[%c0_43, %c0_44] : memref<8x1xf32, #tpu.memory_space<vmem>>, vector<8x1xf32>
      tpu.vector_store %arg7[%c0_43, %c0_44], %79 {strides = array<i32>} : memref<8x1xf32, #tpu.memory_space<vmem>>, vector<8x1xf32>,
    } else {
    }
    %c0 = arith.constant 0 : index
    %c0_1 = arith.constant 0 : index
    %3 = vector.load %arg2[%c0, %c0_1] : memref<512x256xf32, #tpu.memory_space<vmem>>, vector<512x256xf32>
    %4 = arith.mulf %3, %3 : vector<512x256xf32>
    %cst = arith.constant dense<0.000000e+00> : vector<512xf32>
    %5 = vector.multi_reduction <add>, %4, %cst [1] : vector<512x256xf32> to vector<512xf32>
    %6 = vector.shape_cast %5 : vector<512xf32> to vector<512x1xf32>
    %cst_2 = arith.constant 1.000000e-24 : f32
    %7 = vector.broadcast %cst_2 : f32 to vector<512x1xf32>
    %8 = arith.maximumf %6, %7 : vector<512x1xf32>
    %9 = math.rsqrt %8 : vector<512x1xf32>
    %c0_3 = arith.constant 0 : index
    %c0_4 = arith.constant 0 : index
    %10 = vector.load %arg1[%c0_3, %c0_4] : memref<8x256xf32, #tpu.memory_space<vmem>>, vector<8x256xf32>
    %cst_5 = arith.constant dense<0.000000e+00> : vector<8x512xf32>
    %11 = tpu.matmul %10, %3, %cst_5 {dimension_numbers = #tpu.dot_dimension_numbers<[1], [1], [0], [0], [0, 0, 1, 0], [], []>} : vector<8x256xf32>, vector<512x256xf32>, vector<8x512xf32> -> vector<8x512xf32>
    %c0_6 = arith.constant 0 : index
    %c0_7 = arith.constant 0 : index
    %12 = vector.load %arg5[%c0_6, %c0_7] : memref<8x1xf32, #tpu.memory_space<vmem>>, vector<8x1xf32>
    %13 = vector.broadcast %12 : vector<8x1xf32> to vector<8x512xf32>
    %14 = arith.mulf %11, %13 : vector<8x512xf32>
    %15 = tpu.transpose %9, [1, 0] : vector<512x1xf32> -> vector<1x512xf32>
    %16 = vector.broadcast %15 : vector<1x512xf32> to vector<8x512xf32>
    %17 = arith.mulf %14, %16 : vector<8x512xf32>
    %18 = arith.mulf %17, %17 : vector<8x512xf32>
    %cst_8 = arith.constant 1.000000e+00 : f32
    %19 = vector.broadcast %cst_8 : f32 to vector<8x512xf32>
    %20 = arith.subf %19, %18 : vector<8x512xf32>
    %cst_9 = arith.constant 0.000000e+00 : f32
    %21 = vector.broadcast %cst_9 : f32 to vector<8x512xf32>
    %22 = arith.maximumf %21, %20 : vector<8x512xf32>
    %23 = math.sqrt %22 : vector<8x512xf32>
    %cst_10 = arith.constant 9.99999997E-7 : f32
    %cst_11 = arith.constant 1.000000e+00 : f32
    %24 = vector.broadcast %cst_10 : f32 to vector<8x512xf32>
    %25 = arith.maximumf %24, %23 : vector<8x512xf32>
    %26 = vector.broadcast %cst_11 : f32 to vector<8x512xf32>
    %27 = arith.minimumf %26, %25 : vector<8x512xf32>
    %cst_12 = arith.constant dense<0.000000e+00> : vector<512xf32>
    %28 = vector.multi_reduction <add>, %17, %cst_12 [0] : vector<8x512xf32> to vector<512xf32>
    %29 = vector.shape_cast %28 : vector<512xf32> to vector<1x512xf32>
    %cst_13 = arith.constant 8.000000e+00 : f32
    %30 = vector.broadcast %cst_13 : f32 to vector<1x512xf32>
    %31 = arith.divf %29, %30 : vector<1x512xf32>
    %cst_14 = arith.constant dense<0.000000e+00> : vector<512xf32>
    %32 = vector.multi_reduction <add>, %27, %cst_14 [0] : vector<8x512xf32> to vector<512xf32>
    %33 = vector.shape_cast %32 : vector<512xf32> to vector<1x512xf32>
    %cst_15 = arith.constant 8.000000e+00 : f32
    %34 = vector.broadcast %cst_15 : f32 to vector<1x512xf32>
    %35 = arith.divf %33, %34 : vector<1x512xf32>
    %36 = arith.mulf %31, %31 : vector<1x512xf32>
    %37 = arith.mulf %35, %35 : vector<1x512xf32>
    %38 = arith.addf %36, %37 : vector<1x512xf32>
    %39 = math.rsqrt %38 : vector<1x512xf32>
    %40 = arith.mulf %31, %39 : vector<1x512xf32>
    %cst_16 = arith.constant 2.51698208 : f32
    %41 = vector.broadcast %cst_16 : f32 to vector<1x512xf32>
    %42 = arith.mulf %41, %40 : vector<1x512xf32>
    %43 = vector.broadcast %42 : vector<1x512xf32> to vector<8x512xf32>
    %44 = arith.mulf %17, %43 : vector<8x512xf32>
    %45 = arith.index_cast %arg0 : i32 to index
    %c0_17 = arith.constant 0 : index
    %c0_18 = arith.constant 0 : index
    %46 = vector.load %arg4[%45, %c0_17, %c0_18] : memref<1x8x512xf32, #tpu.memory_space<vmem>>, vector<1x8x512xf32>
    %47 = vector.shape_cast %46 : vector<1x8x512xf32> to vector<8x512xf32>
    %48 = vector.shape_cast %44 : vector<8x512xf32> to vector<1x8x512xf32>
    tpu.vector_store %arg4[%45, %c0_17, %c0_18], %48 {strides = array<i32>} : memref<1x8x512xf32, #tpu.memory_space<vmem>>, vector<1x8x512xf32>,
    %cst_19 = arith.constant dense<0xFF800000> : vector<8xf32>
    %49 = vector.multi_reduction <maximumf>, %44, %cst_19 [1] : vector<8x512xf32> to vector<8xf32>
    %50 = vector.shape_cast %49 : vector<8xf32> to vector<8x1xf32>
    %c0_20 = arith.constant 0 : index
    %c0_21 = arith.constant 0 : index
    %51 = vector.load %arg6[%c0_20, %c0_21] : memref<8x1xf32, #tpu.memory_space<vmem>>, vector<8x1xf32>
    %52 = arith.maximumf %51, %50 : vector<8x1xf32>
    %c0_22 = arith.constant 0 : index
    %c0_23 = arith.constant 0 : index
    %53 = vector.load %arg7[%c0_22, %c0_23] : memref<8x1xf32, #tpu.memory_space<vmem>>, vector<8x1xf32>
    %c0_24 = arith.constant 0 : index
    %c0_25 = arith.constant 0 : index
    %54 = vector.load %arg6[%c0_24, %c0_25] : memref<8x1xf32, #tpu.memory_space<vmem>>, vector<8x1xf32>
    %55 = arith.subf %54, %52 : vector<8x1xf32>
    %56 = math.exp %55 : vector<8x1xf32>
    %57 = arith.mulf %53, %56 : vector<8x1xf32>
    %58 = vector.broadcast %52 : vector<8x1xf32> to vector<8x512xf32>
    %59 = arith.subf %44, %58 : vector<8x512xf32>
    %60 = math.exp %59 : vector<8x512xf32>
    %cst_26 = arith.constant dense<0.000000e+00> : vector<8xf32>
    %61 = vector.multi_reduction <add>, %60, %cst_26 [1] : vector<8x512xf32> to vector<8xf32>
    %62 = vector.shape_cast %61 : vector<8xf32> to vector<8x1xf32>
    %63 = arith.addf %57, %62 : vector<8x1xf32>
    %c0_27 = arith.constant 0 : index
    %c0_28 = arith.constant 0 : index
    %64 = vector.load %arg7[%c0_27, %c0_28] : memref<8x1xf32, #tpu.memory_space<vmem>>, vector<8x1xf32>
    tpu.vector_store %arg7[%c0_27, %c0_28], %63 {strides = array<i32>} : memref<8x1xf32, #tpu.memory_space<vmem>>, vector<8x1xf32>,
    %c0_29 = arith.constant 0 : index
    %c0_30 = arith.constant 0 : index
    %65 = vector.load %arg6[%c0_29, %c0_30] : memref<8x1xf32, #tpu.memory_space<vmem>>, vector<8x1xf32>
    tpu.vector_store %arg6[%c0_29, %c0_30], %52 {strides = array<i32>} : memref<8x1xf32, #tpu.memory_space<vmem>>, vector<8x1xf32>,
    %c0_i32_31 = arith.constant 0 : i32
    %66 = arith.cmpi eq, %arg0, %c0_i32_31 : i32
    %67 = arith.extui %66 : i1 to i32
    %c0_i32_32 = arith.constant 0 : i32
    %68 = arith.cmpi ne, %67, %c0_i32_32 : i32
    scf.if %68 {
      %c0_33 = arith.constant 0 : index
      %c0_34 = arith.constant 0 : index
      %69 = vector.load %arg7[%c0_33, %c0_34] : memref<8x1xf32, #tpu.memory_space<vmem>>, vector<8x1xf32>
      %70 = tpu.reciprocal %69 : vector<8x1xf32> -> vector<8x1xf32>
      %c0_35 = arith.constant 0 : index
      %c0_36 = arith.constant 0 : index
      %71 = vector.load %arg6[%c0_35, %c0_36] : memref<8x1xf32, #tpu.memory_space<vmem>>, vector<8x1xf32>
      %c0_37 = arith.constant 0 : index
      %c0_38 = arith.constant 0 : index
      %c0_39 = arith.constant 0 : index
      %72 = vector.load %arg4[%c0_37, %c0_38, %c0_39] : memref<1x8x512xf32, #tpu.memory_space<vmem>>, vector<1x8x512xf32>
      %73 = vector.shape_cast %72 : vector<1x8x512xf32> to vector<8x512xf32>
      %74 = vector.broadcast %71 : vector<8x1xf32> to vector<8x512xf32>
      %75 = arith.subf %73, %74 : vector<8x512xf32>
      %76 = math.exp %75 : vector<8x512xf32>
      %77 = vector.broadcast %70 : vector<8x1xf32> to vector<8x512xf32>
      %78 = arith.mulf %76, %77 : vector<8x512xf32>
      %c0_40 = arith.constant 0 : index
      %c0_41 = arith.constant 0 : index
      %79 = vector.load %arg3[%c0_40, %c0_41] : memref<8x512xf32, #tpu.memory_space<vmem>>, vector<8x512xf32>
      tpu.vector_store %arg3[%c0_40, %c0_41], %78 {strides = array<i32>} : memref<8x512xf32, #tpu.memory_space<vmem>>, vector<8x512xf32>,
    } else {
    }
    return
  }
  func.func @transform_0(%arg0: i32) -> (i32, i32) {
    %c0_i32 = arith.constant 0 : i32
    %c0_i32_0 = arith.constant 0 : i32
    %c0_i32_1 = arith.constant 0 : i32
    return %c0_i32, %c0_i32_0 : i32, i32
  }
  func.func @transform_1(%arg0: i32) -> (i32, i32) {
    %c0_i32 = arith.constant 0 : i32
    %c0_i32_0 = arith.constant 0 : i32
    return %arg0, %c0_i32 : i32, i32
  }
  func.func @transform_2(%arg0: i32) -> (i32, i32) {
    %c0_i32 = arith.constant 0 : i32
    %c0_i32_0 = arith.constant 0 : i32
    %c0_i32_1 = arith.constant 0 : i32
    return %c0_i32, %c0_i32_0 : i32, i32
  }
}

</mosaic_0001>

<bundles_post_ra>
// kernel: tpu_custom_call.1
= control target key start
LH: loop header
LB: loop body
LE: loop exit
PB: predicated region body
PF: predicated region fallthrough
CT: control target
= control target key end

     0   :  { %7 = vsyncpa [#allocation7], 0  ;;  %s3743_s0 = inlined_call_operand.hbm [shape: f32[8,256], index: 0, kind: input, shape index: {}]   ;;  %s3744_s1 = inlined_call_operand.hbm [shape: f32[512,256], index: 1, kind: input, shape index: {}]   ;;  %s3745_s2 = inlined_call_operand.hbm [shape: f32[8,512], index: 2, kind: output, shape index: {}]  }
   0x1   :  { %8 = vsyncpa [#allocation10], 0 }
   0x2   :  { %9 = vsyncpa [#allocation8], 0  ;;  %s15_s11 = sshll.u32 %s3743_s0, 4  ;;  %s2097_s12 = smov [#allocation6]   ;;  %s16_s11 = int_to_ptr.hbm [resolvable:$true] %s15_s11 }
   0x3   :  { %s17_s13 = sshll.u32 %s2097_s12, 4  ;;  %s25_s16 = sshll.u32 %s3744_s1, 4  ;;  %s18_s13 = int_to_ptr.vmem [resolvable:$true] %s17_s13  ;;  %s26_s16 = int_to_ptr.hbm [resolvable:$true] %s25_s16 }
   0x4   :  { %20 = dma.hbm_to_vmem [thread:$0]  %s16_s11, 256, %s18_s13, [#allocation7]  }
   0x5   :  { %s2098_s17 = smov [#allocation9]   ;;  %s2099_s19 = smov 256  }
   0x6   :  { %s27_s18 = sshll.u32 %s2098_s17, 4  ;;  %s2100_s20 = smov 16   ;;  %s28_s18 = int_to_ptr.vmem [resolvable:$true] %s27_s18 }
   0x7   :  { %33 = dma.hbm_to_vmem [thread:$0]  %s26_s16, 16384, %s28_s18, [#allocation10], %s2099_s19, %s2099_s19, %s2100_s20  }
   0x8   :  { %2091 = dma.done.wait [#allocation7], 256  }
   0x9   :  { %2092 = vsyncadd [#allocation7], 4294967040 }
   0xa   :  { %2093 = dma.done.wait [#allocation10], 16384  }
   0xb   :  { %2094 = vsyncadd [#allocation10], 4294950912  ;;  %v2127_v0 = vld [vmem:[#allocation9 + $0x30] sm:$0xff]  ;;  %v2129_v1 = vld [vmem:[#allocation9 + $0x38] sm:$0xff]  ;;  %vm64_vm1 = vcmask 7168   ;;  %s2105_s0 = smov [#allocation11]  }
   0xc   :  { %v2131_v2 = vld [vmem:[#allocation9 + $0x10] sm:$0xff]  ;;  %v202_v3 = vmul.f32 %v2127_v0, %v2127_v0  ;;  %v203_v4 = vmul.f32 %v2129_v1, %v2129_v1  ;;  %v2137_v5 = vld [vmem:[#allocation9 + $0x18] sm:$0xff]  ;;  %v2143_v12 = vld [vmem:[#allocation9 + $0x40] sm:$0xff]  ;;  %s1826_s1 = sshll.u32 %s2105_s0, 4  ;;  %s1828_s23 = sshll.u32 %s3745_s2, 4  ;;  %s1827_s1 = int_to_ptr.vmem [resolvable:$true] %s1826_s1  ;;  %s1829_s23 = int_to_ptr.hbm [resolvable:$true] %s1828_s23 }
   0xd   :  { %v198_v6 = vmul.f32 %v2131_v2, %v2131_v2  ;;  %v46_v7 = vld [vmem:[#allocation6] sm:$0xff]  ;;  %v47_v8 = vld [vmem:[#allocation6 + $0x8] sm:$0xff]  ;;  %v199_v9 = vmul.f32 %v2137_v5, %v2137_v5  ;;  %v2145_v13 = vld [vmem:[#allocation9 + $0x48] sm:$0xff]  ;;  %v204_v21 = vmul.f32 %v2143_v12, %v2143_v12 }
   0xe   :  { %v48_v10 = vmul.f32 %v46_v7, %v46_v7  ;;  %v49_v11 = vmul.f32 %v47_v8, %v47_v8  ;;  %v2147_v14 = vld [vmem:[#allocation9 + $0x20] sm:$0xff]  ;;  %v333_v15 = vadd.f32 %v203_v4, %v202_v3  ;;  %v2149_v16 = vld [vmem:[#allocation9 + $0x28] sm:$0xff]  ;;  %v205_v22 = vmul.f32 %v2145_v13, %v2145_v13  ;;  %v2167_v27 = vld [vmem:[#allocation9 + $0x1f0] sm:$0xff] }
   0xf   :  { %v2151_v17 = vld [vmem:[#allocation9] sm:$0xff]  ;;  %v2153_v18 = vld [vmem:[#allocation9 + $0x8] sm:$0xff]  ;;  %v327_v19 = vadd.f32 %v199_v9, %v198_v6  ;;  %v200_v23 = vmul.f32 %v2147_v14, %v2147_v14  ;;  %v201_v24 = vmul.f32 %v2149_v16, %v2149_v16  ;;  %v2169_v28 = vld [vmem:[#allocation9 + $0x1f8] sm:$0xff]  ;;  %1262 = vmatpush.xpose.msra.mxu2 %v2167_v27 }
  0x10   :  { %v50_v20 = vadd.f32 %v49_v11, %v48_v10  ;;  %334 = vadd.xlane.f32.xlu2 %v333_v15  ;;  %v196_v25 = vmul.f32 %v2151_v17, %v2151_v17  ;;  %v197_v26 = vmul.f32 %v2153_v18, %v2153_v18  ;;  %v336_v29 = vadd.f32 %v205_v22, %v204_v21  ;;  %v2171_v30 = vld [vmem:[#allocation9 + $0x70] sm:$0xff]  ;;  %v2176_v32 = vld [vmem:[#allocation9 + $0xf8] sm:$0xff]  ;;  %v2180_v36 = vld [vmem:[#allocation9 + $0x60] sm:$0xff] }
  0x11   :  { %328 = vadd.xlane.f32.xlu1 %v327_v19  ;;  %v2174_v31 = vld [vmem:[#allocation9 + $0xf0] sm:$0xff]  ;;  %v330_v33 = vadd.f32 %v201_v24, %v200_v23  ;;  %v2178_v35 = vld [vmem:[#allocation9 + $0x78] sm:$0xff]  ;;  %1282 = vmatpush.xpose.msra.mxu3 %v2169_v28  ;;  %v2183_v37 = vld [vmem:[#allocation9 + $0x1e0] sm:$0xff]  ;;  %v210_v43 = vmul.f32 %v2171_v30, %v2171_v30  ;;  %v208_v45 = vmul.f32 %v2180_v36, %v2180_v36 }
  0x12   :  { %51 = vadd.xlane.f32.xlu0 %v50_v20  ;;  %v324_v34 = vadd.f32 %v197_v26, %v196_v25  ;;  %v2185_v38 = vld [vmem:[#allocation9 + $0x68] sm:$0xff]  ;;  %v2187_v39 = vld [vmem:[#allocation9 + $0x50] sm:$0xff]  ;;  %v2189_v40 = vld [vmem:[#allocation9 + $0x58] sm:$0xff]  ;;  %1222 = vmatpush.xpose.msra.mxu0 %v2174_v31  ;;  %v211_v44 = vmul.f32 %v2178_v35, %v2178_v35 }
  0x13   :  { %v2192_v41 = vld [vmem:[#allocation9 + $0x1e8] sm:$0xff]  ;;  %1242 = vmatpush.xpose.msra.mxu1 %v2176_v32  ;;  %v2195_v42 = vld [vmem:[#allocation9 + $0xe0] sm:$0xff]  ;;  %1263 = vmatpush.xpose.msra.mxu2 %v2183_v37  ;;  %v209_v47 = vmul.f32 %v2185_v38, %v2185_v38  ;;  %v206_v48 = vmul.f32 %v2187_v39, %v2187_v39  ;;  %v207_v49 = vmul.f32 %v2189_v40, %v2189_v40  ;;  %v2212_v50 = vld [vmem:[#allocation9 + $0x1d0] sm:$0xff] }
  0x14   :  { %v2204_v46 = vld [vmem:[#allocation9 + $0xe8] sm:$0xff]  ;;  %v2216_v51 = vld [vmem:[#allocation9 + $0x1d8] sm:$0xff]  ;;  %v345_v52 = vadd.f32 %v211_v44, %v210_v43  ;;  %v88_v53 = vld [vmem:[#allocation9 + $0xa0] sm:$0xff] }
  0x15   :  { %1283 = vmatpush.xpose.msra.mxu3 %v2192_v41  ;;  %v89_v54 = vld [vmem:[#allocation9 + $0xa8] sm:$0xff]  ;;  %v2219_v55 = vld [vmem:[#allocation9 + $0x90] sm:$0xff]  ;;  %v342_v56 = vadd.f32 %v209_v47, %v208_v45  ;;  %v339_v57 = vadd.f32 %v207_v49, %v206_v48  ;;  %v87_v58 = vld [vmem:[#allocation9 + $0x98] sm:$0xff]  ;;  %v216_v4 = vmul.f32 %v88_v53, %v88_v53 }
  0x16   :  { %1223 = vmatpush.xpose.msra.mxu0 %v2195_v42  ;;  %v94_v59 = vld [vmem:[#allocation9 + $0xd0] sm:$0xff]  ;;  %v2222_v60 = vld [vmem:[#allocation9 + $0x1c0] sm:$0xff]  ;;  %v2226_v62 = vld [vmem:[#allocation9 + $0x88] sm:$0xff]  ;;  %v217_v6 = vmul.f32 %v89_v54, %v89_v54  ;;  %v214_v7 = vmul.f32 %v2219_v55, %v2219_v55  ;;  %v215_v8 = vmul.f32 %v87_v58, %v87_v58 }
  0x17   :  { %1243 = vmatpush.xpose.msra.mxu1 %v2204_v46  ;;  %1264 = vmatpush.xpose.msra.mxu2 %v2212_v50  ;;  %v2224_v61 = vld [vmem:[#allocation9 + $0x80] sm:$0xff]  ;;  %v95_v63 = vld [vmem:[#allocation9 + $0xd8] sm:$0xff]  ;;  %v2229_v3 = vld [vmem:[#allocation9 + $0x1c8] sm:$0xff]  ;;  %v213_v10 = vmul.f32 %v2226_v62, %v2226_v62 }
  0x18   :  { %337 = vadd.xlane.f32.xlu2 %v336_v29  ;;  %v212_v9 = vmul.f32 %v2224_v61, %v2224_v61  ;;  %v92_v11 = vld [vmem:[#allocation9 + $0xc0] sm:$0xff]  ;;  %v2238_v15 = vld [vmem:[#allocation9 + $0x1b0] sm:$0xff]  ;;  %v93_v19 = vld [vmem:[#allocation9 + $0xc8] sm:$0xff]  ;;  %v354_v21 = vadd.f32 %v217_v6, %v216_v4  ;;  %v351_v22 = vadd.f32 %v215_v8, %v214_v7  ;;  %v227_v8 = vmul.f32 %v2176_v32, %v2176_v32 }
  0x19   :  { %331 = vadd.xlane.f32.xlu1 %v330_v33  ;;  %1284 = vmatpush.xpose.msra.mxu3 %v2216_v51  ;;  %v2241_v20 = vld [vmem:[#allocation9 + $0x1b8] sm:$0xff]  ;;  %v90_v24 = vld [vmem:[#allocation9 + $0xb0] sm:$0xff]  ;;  %v2244_v25 = vld [vmem:[#allocation9 + $0x1a0] sm:$0xff]  ;;  %v222_v33 = vmul.f32 %v94_v59, %v94_v59  ;;  %v220_v43 = vmul.f32 %v92_v11, %v92_v11  ;;  %v221_v44 = vmul.f32 %v93_v19, %v93_v19 }
  0x1a   :  { %325 = vadd.xlane.f32.xlu0 %v324_v34  ;;  %1224 = vmatpush.xpose.msra.mxu0 %v94_v59  ;;  %v348_v23 = vadd.f32 %v213_v10, %v212_v9  ;;  %v91_v26 = vld [vmem:[#allocation9 + $0xb8] sm:$0xff]  ;;  %v2247_v29 = vld [vmem:[#allocation9 + $0x1a8] sm:$0xff]  ;;  %v223_v34 = vmul.f32 %v95_v63, %v95_v63  ;;  %v218_v45 = vmul.f32 %v90_v24, %v90_v24  ;;  %v2250_v48 = vld [vmem:[#allocation9 + $0x190] sm:$0xff] }
  0x1b   :  { %1244 = vmatpush.xpose.msra.mxu1 %v95_v63  ;;  %1265 = vmatpush.xpose.msra.mxu2 %v2222_v60  ;;  %v219_v47 = vmul.f32 %v91_v26, %v91_v26  ;;  %v2253_v49 = vld [vmem:[#allocation9 + $0x198] sm:$0xff]  ;;  %v2256_v59 = vld [vmem:[#allocation9 + $0x100] sm:$0xff]  ;;  %v2258_v63 = vld [vmem:[#allocation9 + $0x108] sm:$0xff] }
  0x1c   :  { %v2260_v4 = vld [vmem:[#allocation9 + $0x180] sm:$0xff]  ;;  %v2264_v6 = vld [vmem:[#allocation9 + $0x188] sm:$0xff]  ;;  %v229_v7 = vmul.f32 %v2258_v63, %v2258_v63  ;;  %v2283_v9 = vld [vmem:[#allocation9 + $0x178] sm:$0xff] }
  0x1d   :  { %1285 = vmatpush.xpose.msra.mxu3 %v2229_v3 }
  0x1e   :  { %1225 = vmatpush.xpose.msra.mxu0 %v92_v11 }
  0x1f   :  { %1245 = vmatpush.xpose.msra.mxu1 %v93_v19  ;;  %1266 = vmatpush.xpose.msra.mxu2 %v2238_v15  ;;  %v106_v19 = vld [vmem:[#allocation9 + $0x130] sm:$0xff] }
  0x20   :  { %346 = vadd.xlane.f32.xlu2 %v345_v52  ;;  %v363_v52 = vadd.f32 %v223_v34, %v222_v33 }
  0x21   :  { %343 = vadd.xlane.f32.xlu1 %v342_v56  ;;  %1286 = vmatpush.xpose.msra.mxu3 %v2241_v20  ;;  %v360_v56 = vadd.f32 %v221_v44, %v220_v43  ;;  %v113_v44 = vld [vmem:[#allocation9 + $0x168] sm:$0xff] }
  0x22   :  { %340 = vadd.xlane.f32.xlu0 %v339_v57  ;;  %1226 = vmatpush.xpose.msra.mxu0 %v90_v24  ;;  %v357_v57 = vadd.f32 %v219_v47, %v218_v45 }
  0x23   :  { %1246 = vmatpush.xpose.msra.mxu1 %v91_v26  ;;  %1267 = vmatpush.xpose.msra.mxu2 %v2244_v25 }
  0x25   :  { %1287 = vmatpush.xpose.msra.mxu3 %v2247_v29 }
  0x26   :  { %1227 = vmatpush.xpose.msra.mxu0 %v88_v53  ;;  %v226_v53 = vmul.f32 %v2174_v31, %v2174_v31  ;;  %v225_v31 = vmul.f32 %v2204_v46, %v2204_v46  ;;  %v2287_v46 = vld [vmem:[#allocation9 + $0x110] sm:$0xff] }
  0x27   :  { %1247 = vmatpush.xpose.msra.mxu1 %v89_v54  ;;  %1268 = vmatpush.xpose.msra.mxu2 %v2250_v48  ;;  %v228_v54 = vmul.f32 %v2256_v59, %v2256_v59  ;;  %v230_v34 = vmul.f32 %v2287_v46, %v2287_v46 }
  0x28   :  { %355 = vadd.xlane.f32.xlu2 %v354_v21  ;;  %v369_v32 = vadd.f32 %v227_v8, %v226_v53  ;;  %v104_v21 = vld [vmem:[#allocation9 + $0x120] sm:$0xff] }
  0x29   :  { %352 = vadd.xlane.f32.xlu1 %v351_v22  ;;  %1288 = vmatpush.xpose.msra.mxu3 %v2253_v49  ;;  %v372_v10 = vadd.f32 %v229_v7, %v228_v54  ;;  %v105_v22 = vld [vmem:[#allocation9 + $0x128] sm:$0xff]  ;;  %v232_v26 = vmul.f32 %v104_v21, %v104_v21  ;;  %v241_v54 = vmul.f32 %v113_v44, %v113_v44 }
  0x2a   :  { %349 = vadd.xlane.f32.xlu0 %v348_v23  ;;  %1228 = vmatpush.xpose.msra.mxu0 %v2219_v55  ;;  %v224_v55 = vmul.f32 %v2195_v42, %v2195_v42  ;;  %v107_v42 = vld [vmem:[#allocation9 + $0x138] sm:$0xff]  ;;  %v233_v33 = vmul.f32 %v105_v22, %v105_v22 }
  0x2b   :  { %1248 = vmatpush.xpose.msra.mxu1 %v87_v58  ;;  %1269 = vmatpush.xpose.msra.mxu2 %v2260_v4  ;;  %v2279_v58 = vld [vmem:[#allocation9 + $0x170] sm:$0xff]  ;;  %v2289_v23 = vld [vmem:[#allocation9 + $0x118] sm:$0xff]  ;;  %v235_v24 = vmul.f32 %v107_v42, %v107_v42 }
  0x2c   :  { %v366_v11 = vadd.f32 %v225_v31, %v224_v55  ;;  %v231_v43 = vmul.f32 %v2289_v23, %v2289_v23  ;;  %v378_v45 = vadd.f32 %v233_v33, %v232_v26 }
  0x2d   :  { %1289 = vmatpush.xpose.msra.mxu3 %v2264_v6 }
  0x2e   :  { %1229 = vmatpush.xpose.msra.mxu0 %v2224_v61  ;;  %v112_v61 = vld [vmem:[#allocation9 + $0x160] sm:$0xff]  ;;  %v375_v47 = vadd.f32 %v231_v43, %v230_v34  ;;  %v2386_v43 = vld [vmem:[#allocation9 + $0x3d8] sm:$0xff] }
  0x2f   :  { %1249 = vmatpush.xpose.msra.mxu1 %v2226_v62  ;;  %1270 = vmatpush.xpose.msra.mxu2 %v2279_v58  ;;  %v234_v62 = vmul.f32 %v106_v19, %v106_v19  ;;  %v240_v53 = vmul.f32 %v112_v61, %v112_v61 }
  0x30   :  { %364 = vadd.xlane.f32.xlu2 %v363_v52  ;;  %v111_v52 = vld [vmem:[#allocation9 + $0x158] sm:$0xff] }
  0x31   :  { %361 = vadd.xlane.f32.xlu1 %v360_v56  ;;  %1290 = vmatpush.xpose.msra.mxu3 %v2283_v9  ;;  %v108_v56 = vld [vmem:[#allocation9 + $0x140] sm:$0xff]  ;;  %v390_v55 = vadd.f32 %v241_v54, %v240_v53  ;;  %v2406_v53 = vld [vmem:[#allocation9 + $0x3c8] sm:$0xff] }
  0x32   :  { %358 = vadd.xlane.f32.xlu0 %v357_v57  ;;  %1230 = vmatpush.xpose.msra.mxu0 %v2171_v30  ;;  %v110_v30 = vld [vmem:[#allocation9 + $0x150] sm:$0xff]  ;;  %v109_v57 = vld [vmem:[#allocation9 + $0x148] sm:$0xff]  ;;  %3785 = vst [vmem:[#allocation30_spill] sm:$0xff] %v2406_v53 }
  0x33   :  { %1250 = vmatpush.xpose.msra.mxu1 %v2178_v35  ;;  %1271 = vmatpush.xpose.msra.mxu2 %v112_v61  ;;  %v381_v35 = vadd.f32 %v235_v24, %v234_v62  ;;  %v238_v7 = vmul.f32 %v110_v30, %v110_v30  ;;  %v237_v8 = vmul.f32 %v109_v57, %v109_v57  ;;  %v2370_v61 = vld [vmem:[#allocation9 + $0x300] sm:$0xff]  ;;  %v2372_v62 = vld [vmem:[#allocation9 + $0x308] sm:$0xff] }
  0x34   :  { %3781 = vst [vmem:[#allocation26_spill] sm:$0xff] %v2370_v61  ;;  %v2378_v24 = vld [vmem:[#allocation9 + $0x2e8] sm:$0xff] }
  0x35   :  { %1291 = vmatpush.xpose.msra.mxu3 %v113_v44  ;;  %3782 = vst [vmem:[#allocation27_spill] sm:$0xff] %v2372_v62 }
  0x36   :  { %1231 = vmatpush.xpose.msra.mxu0 %v2180_v36  ;;  %v239_v36 = vmul.f32 %v111_v52, %v111_v52  ;;  %3783 = vst [vmem:[#allocation28_spill] sm:$0xff] %v2378_v24 }
  0x37   :  { %1251 = vmatpush.xpose.msra.mxu1 %v2185_v38  ;;  %1272 = vmatpush.xpose.msra.mxu2 %v110_v30  ;;  %v236_v38 = vmul.f32 %v108_v56, %v108_v56  ;;  %v292_v30 = vmul.f32 %v2370_v61, %v2370_v61  ;;  %v147_v61 = vld [vmem:[#allocation9 + $0x278] sm:$0xff] }
  0x38   :  { %373 = vadd.xlane.f32.xlu2 %v372_v10  ;;  %v247_v10 = vmul.f32 %v2253_v49, %v2253_v49 }
  0x39   :  { %370 = vadd.xlane.f32.xlu1 %v369_v32  ;;  %1292 = vmatpush.xpose.msra.mxu3 %v111_v52  ;;  %v384_v31 = vadd.f32 %v237_v8, %v236_v38  ;;  %v2321_v32 = vld [vmem:[#allocation9 + $0x200] sm:$0xff]  ;;  %v2402_v52 = vld [vmem:[#allocation9 + $0x2d8] sm:$0xff] }
  0x3a   :  { %367 = vadd.xlane.f32.xlu0 %v366_v11  ;;  %1232 = vmatpush.xpose.msra.mxu0 %v2187_v39  ;;  %v387_v39 = vadd.f32 %v239_v36, %v238_v7  ;;  %3770 = vst [vmem:[#allocation15_spill] sm:$0xff] %v2321_v32  ;;  %v2337_v11 = vld [vmem:[#allocation9 + $0x3f8] sm:$0xff]  ;;  %v2411_v38 = vld [vmem:[#allocation9 + $0x320] sm:$0xff] }
  0x3b   :  { %1252 = vmatpush.xpose.msra.mxu1 %v2189_v40  ;;  %1273 = vmatpush.xpose.msra.mxu2 %v108_v56  ;;  %v246_v40 = vmul.f32 %v2250_v48, %v2250_v48  ;;  %3773 = vst [vmem:[#allocation18_spill] sm:$0xff] %v2337_v11  ;;  %v2409_v36 = vld [vmem:[#allocation9 + $0x238] sm:$0xff]  ;;  %v2413_v8 = vld [vmem:[#allocation9 + $0x2c0] sm:$0xff] }
  0x3c   :  { %3786 = vst [vmem:[#allocation31_spill] sm:$0xff] %v2413_v8 }
  0x3d   :  { %1293 = vmatpush.xpose.msra.mxu3 %v109_v57  ;;  %v399_v48 = vadd.f32 %v247_v10, %v246_v40  ;;  %v2404_v57 = vld [vmem:[#allocation9 + $0x230] sm:$0xff]  ;;  %v2426_v10 = vld [vmem:[#allocation9 + $0x2c8] sm:$0xff] }
  0x3e   :  { %1233 = vmatpush.xpose.msra.mxu0 %v2143_v12  ;;  %v244_v12 = vmul.f32 %v2260_v4, %v2260_v4  ;;  %v2424_v40 = vld [vmem:[#allocation9 + $0x3b0] sm:$0xff]  ;;  %3788 = vst [vmem:[#allocation33_spill] sm:$0xff] %v2426_v10 }
  0x3f   :  { %1253 = vmatpush.xpose.msra.mxu1 %v2145_v13  ;;  %1274 = vmatpush.xpose.msra.mxu2 %v106_v19  ;;  %v245_v13 = vmul.f32 %v2264_v6, %v2264_v6  ;;  %v2323_v6 = vld [vmem:[#allocation9 + $0x208] sm:$0xff]  ;;  %v2345_v19 = vld [vmem:[#allocation9 + $0x2f0] sm:$0xff]  ;;  %3787 = vst [vmem:[#allocation32_spill] sm:$0xff] %v2424_v40 }
  0x40   :  { %382 = vadd.xlane.f32.xlu2 %v381_v35  ;;  %3771 = vst [vmem:[#allocation16_spill] sm:$0xff] %v2323_v6  ;;  %v293_v35 = vmul.f32 %v2372_v62, %v2372_v62  ;;  %v252_v62 = vmul.f32 %v2222_v60, %v2222_v60 }
  0x41   :  { %379 = vadd.xlane.f32.xlu1 %v378_v45  ;;  %1294 = vmatpush.xpose.msra.mxu3 %v107_v42  ;;  %v396_v49 = vadd.f32 %v245_v13, %v244_v12  ;;  %3774 = vst [vmem:[#allocation19_spill] sm:$0xff] %v2345_v19  ;;  %v2352_v42 = vld [vmem:[#allocation9 + $0x3e0] sm:$0xff]  ;;  %v2395_v45 = vld [vmem:[#allocation9 + $0x2d0] sm:$0xff]  ;;  %v266_v12 = vmul.f32 %v2404_v57, %v2404_v57 }
  0x42   :  { %376 = vadd.xlane.f32.xlu0 %v375_v47  ;;  %1234 = vmatpush.xpose.msra.mxu0 %v2127_v0  ;;  %v242_v0 = vmul.f32 %v2279_v58, %v2279_v58  ;;  %v2327_v58 = vld [vmem:[#allocation9 + $0x3f0] sm:$0xff]  ;;  %v2400_v47 = vld [vmem:[#allocation9 + $0x3c0] sm:$0xff]  ;;  %v468_v7 = vadd.f32 %v293_v35, %v292_v30  ;;  %v267_v13 = vmul.f32 %v2409_v36, %v2409_v36  ;;  %v2467_v30 = vld [vmem:[#allocation9 + $0x338] sm:$0xff] }
  0x43   :  { %1254 = vmatpush.xpose.msra.mxu1 %v2129_v1  ;;  %1275 = vmatpush.xpose.msra.mxu2 %v104_v21  ;;  %v243_v1 = vmul.f32 %v2283_v9, %v2283_v9  ;;  %3772 = vst [vmem:[#allocation17_spill] sm:$0xff] %v2327_v58  ;;  %v261_v9 = vmul.f32 %v2323_v6, %v2323_v6  ;;  %v2472_v35 = vld [vmem:[#allocation9 + $0x390] sm:$0xff]  ;;  %v175_v6 = vld [vmem:[#allocation9 + $0x358] sm:$0xff] }
  0x44   :  { %3784 = vst [vmem:[#allocation29_spill] sm:$0xff] %v2400_v47 }
  0x45   :  { %1295 = vmatpush.xpose.msra.mxu3 %v105_v22  ;;  %v393_v4 = vadd.f32 %v243_v1, %v242_v0  ;;  %v2361_v22 = vld [vmem:[#allocation9 + $0x318] sm:$0xff]  ;;  %v296_v0 = vmul.f32 %v2411_v38, %v2411_v38 }
  0x46   :  { %1235 = vmatpush.xpose.msra.mxu0 %v2147_v14  ;;  %v250_v14 = vmul.f32 %v2238_v15, %v2238_v15  ;;  %v249_v15 = vmul.f32 %v2247_v29, %v2247_v29  ;;  %v2357_v29 = vld [vmem:[#allocation9 + $0x3e8] sm:$0xff]  ;;  %3777 = vst [vmem:[#allocation22_spill] sm:$0xff] %v2361_v22  ;;  %v295_v33 = vmul.f32 %v2361_v22, %v2361_v22  ;;  %v2434_v1 = vld [vmem:[#allocation9 + $0x3b8] sm:$0xff] }
  0x47   :  { %1255 = vmatpush.xpose.msra.mxu1 %v2149_v16  ;;  %1276 = vmatpush.xpose.msra.mxu2 %v2287_v46  ;;  %v260_v16 = vmul.f32 %v2321_v32, %v2321_v32  ;;  %3776 = vst [vmem:[#allocation21_spill] sm:$0xff] %v2357_v29  ;;  %v2363_v46 = vld [vmem:[#allocation9 + $0x210] sm:$0xff]  ;;  %v179_v32 = vld [vmem:[#allocation9 + $0x378] sm:$0xff] }
  0x48   :  { %391 = vadd.xlane.f32.xlu2 %v390_v55  ;;  %3778 = vst [vmem:[#allocation23_spill] sm:$0xff] %v2363_v46  ;;  %v262_v34 = vmul.f32 %v2363_v46, %v2363_v46  ;;  %v2415_v55 = vld [vmem:[#allocation9 + $0x328] sm:$0xff]  ;;  %v176_v46 = vld [vmem:[#allocation9 + $0x360] sm:$0xff]  ;;  %v307_v60 = vmul.f32 %v179_v32, %v179_v32 }
  0x49   :  { %388 = vadd.xlane.f32.xlu1 %v387_v39  ;;  %1296 = vmatpush.xpose.msra.mxu3 %v2289_v23  ;;  %v2366_v23 = vld [vmem:[#allocation9 + $0x2e0] sm:$0xff]  ;;  %3789 = vst [vmem:[#allocation34_spill] sm:$0xff] %v2434_v1 }
  0x4a   :  { %385 = vadd.xlane.f32.xlu0 %v384_v31  ;;  %1236 = vmatpush.xpose.msra.mxu0 %v2131_v2  ;;  %v251_v2 = vmul.f32 %v2241_v20, %v2241_v20  ;;  %v420_v20 = vadd.f32 %v261_v9, %v260_v16  ;;  %3779 = vst [vmem:[#allocation24_spill] sm:$0xff] %v2366_v23  ;;  %v2417_v39 = vld [vmem:[#allocation9 + $0x220] sm:$0xff]  ;;  %v2419_v31 = vld [vmem:[#allocation9 + $0x228] sm:$0xff]  ;;  %v2450_v9 = vld [vmem:[#allocation9 + $0x2b8] sm:$0xff] }
  0x4b   :  { %1256 = vmatpush.xpose.msra.mxu1 %v2137_v5  ;;  %1277 = vmatpush.xpose.msra.mxu2 %v2256_v59  ;;  %v248_v5 = vmul.f32 %v2244_v25, %v2244_v25  ;;  %v2349_v59 = vld [vmem:[#allocation9 + $0x2f8] sm:$0xff]  ;;  %v2355_v25 = vld [vmem:[#allocation9 + $0x310] sm:$0xff]  ;;  %v2448_v16 = vld [vmem:[#allocation9 + $0x3a0] sm:$0xff]  ;;  %3791 = vst [vmem:[#allocation36_spill] sm:$0xff] %v2450_v9 }
  0x4c   :  { %3775 = vst [vmem:[#allocation20_spill] sm:$0xff] %v2349_v59  ;;  %v294_v26 = vmul.f32 %v2355_v25, %v2355_v25 }
  0x4d   :  { %1297 = vmatpush.xpose.msra.mxu3 %v2258_v63  ;;  %v405_v63 = vadd.f32 %v251_v2, %v250_v14  ;;  %v402_v21 = vadd.f32 %v249_v15, %v248_v5  ;;  %v2443_v14 = vld [vmem:[#allocation9 + $0x2b0] sm:$0xff]  ;;  %v429_v2 = vadd.f32 %v267_v13, %v266_v12  ;;  %v2452_v5 = vld [vmem:[#allocation9 + $0x340] sm:$0xff]  ;;  %v2454_v15 = vld [vmem:[#allocation9 + $0x3a8] sm:$0xff] }
  0x4e   :  { %1237 = vmatpush.xpose.msra.mxu0 %v2151_v17  ;;  %v2368_v17 = vld [vmem:[#allocation9 + $0x218] sm:$0xff]  ;;  %v471_v56 = vadd.f32 %v295_v33, %v294_v26  ;;  %3790 = vst [vmem:[#allocation35_spill] sm:$0xff] %v2443_v14  ;;  %v2459_v26 = vld [vmem:[#allocation9 + $0x240] sm:$0xff] }
  0x4f   :  { %1342 = vmatpush.xpose.msrb.mxu2 %v2327_v58  ;;  %1257 = vmatpush.xpose.msra.mxu1 %v2153_v18  ;;  %3780 = vst [vmem:[#allocation25_spill] sm:$0xff] %v2368_v17  ;;  %v2376_v18 = vld [vmem:[#allocation9 + $0x3d0] sm:$0xff]  ;;  %v263_v44 = vmul.f32 %v2368_v17, %v2368_v17  ;;  %v2461_v33 = vld [vmem:[#allocation9 + $0x2a0] sm:$0xff]  ;;  %v268_v12 = vmul.f32 %v2459_v26, %v2459_v26  ;;  %v2482_v13 = vld [vmem:[#allocation9 + $0x398] sm:$0xff] }
  0x50   :  { %400 = vadd.xlane.f32.xlu2 %v399_v48  ;;  %v297_v48 = vmul.f32 %v2415_v55, %v2415_v55  ;;  %v143_v58 = vld [vmem:[#allocation9 + $0x258] sm:$0xff] }
  0x51   :  { %397 = vadd.xlane.f32.xlu1 %v396_v49  ;;  %1362 = vmatpush.xpose.msrb.mxu3 %v2337_v11  ;;  %v423_v54 = vadd.f32 %v263_v44, %v262_v34  ;;  %v264_v49 = vmul.f32 %v2417_v39, %v2417_v39  ;;  %v2463_v34 = vld [vmem:[#allocation9 + $0x248] sm:$0xff]  ;;  %v2465_v44 = vld [vmem:[#allocation9 + $0x330] sm:$0xff] }
  0x52   :  { %394 = vadd.xlane.f32.xlu0 %v393_v4  ;;  %1302 = vmatpush.xpose.msrb.mxu0 %v2345_v19  ;;  %v265_v4 = vmul.f32 %v2419_v31, %v2419_v31  ;;  %v174_v19 = vld [vmem:[#allocation9 + $0x350] sm:$0xff] }
  0x53   :  { %1322 = vmatpush.xpose.msrb.mxu1 %v2349_v59  ;;  %1343 = vmatpush.xpose.msrb.mxu2 %v2352_v42  ;;  %v145_v59 = vld [vmem:[#allocation9 + $0x268] sm:$0xff]  ;;  %v142_v11 = vld [vmem:[#allocation9 + $0x250] sm:$0xff] }
  0x55   :  { %1363 = vmatpush.xpose.msrb.mxu3 %v2357_v29 }
  0x56   :  { %1303 = vmatpush.xpose.msrb.mxu0 %v2366_v23 }
  0x57   :  { %1344 = vmatpush.xpose.msrb.mxu2 %v2376_v18  ;;  %1323 = vmatpush.xpose.msrb.mxu1 %v2378_v24  ;;  %v177_v24 = vld [vmem:[#allocation9 + $0x368] sm:$0xff] }
  0x58   :  { %421 = vadd.xlane.f32.xlu2 %v420_v20  ;;  %v474_v20 = vadd.f32 %v297_v48, %v296_v0  ;;  %v269_v0 = vmul.f32 %v2463_v34, %v2463_v34  ;;  %v298_v48 = vmul.f32 %v2465_v44, %v2465_v44 }
  0x59   :  { %406 = vadd.xlane.f32.xlu1 %v405_v63  ;;  %1364 = vmatpush.xpose.msrb.mxu3 %v2386_v43  ;;  %v426_v63 = vadd.f32 %v265_v4, %v264_v49  ;;  %v299_v49 = vmul.f32 %v2467_v30, %v2467_v30  ;;  %v2491_v4 = vld [vmem:[#allocation9 + $0x290] sm:$0xff] }
  0x5a   :  { %403 = vadd.xlane.f32.xlu0 %v402_v21  ;;  %1304 = vmatpush.xpose.msrb.mxu0 %v2395_v45  ;;  %v2457_v21 = vld [vmem:[#allocation9 + $0x348] sm:$0xff] }
  0x5b   :  { %1345 = vmatpush.xpose.msrb.mxu2 %v2400_v47  ;;  %1324 = vmatpush.xpose.msrb.mxu1 %v2402_v52  ;;  %v144_v47 = vld [vmem:[#allocation9 + $0x260] sm:$0xff] }
  0x5d   :  { %1365 = vmatpush.xpose.msrb.mxu3 %v2406_v53  ;;  %v477_v53 = vadd.f32 %v299_v49, %v298_v48  ;;  %v271_v48 = vmul.f32 %v143_v58, %v143_v58  ;;  %v178_v49 = vld [vmem:[#allocation9 + $0x370] sm:$0xff] }
  0x5e   :  { %1305 = vmatpush.xpose.msrb.mxu0 %v2413_v8  ;;  %v432_v8 = vadd.f32 %v269_v0, %v268_v12  ;;  %v303_v12 = vmul.f32 %v175_v6, %v175_v6  ;;  %v270_v0 = vmul.f32 %v142_v11, %v142_v11  ;;  %v306_v29 = vmul.f32 %v178_v49, %v178_v49 }
  0x5f   :  { %1346 = vmatpush.xpose.msrb.mxu2 %v2424_v40  ;;  %1325 = vmatpush.xpose.msrb.mxu1 %v2426_v10  ;;  %v2500_v10 = vld [vmem:[#allocation9 + $0x388] sm:$0xff]  ;;  %v146_v40 = vld [vmem:[#allocation9 + $0x270] sm:$0xff] }
  0x60   :  { %472 = vadd.xlane.f32.xlu2 %v471_v56  ;;  %v2474_v56 = vld [vmem:[#allocation9 + $0x2a8] sm:$0xff]  ;;  %v274_v22 = vmul.f32 %v146_v40, %v146_v40 }
  0x61   :  { %424 = vadd.xlane.f32.xlu1 %v423_v54  ;;  %1366 = vmatpush.xpose.msrb.mxu3 %v2434_v1  ;;  %v300_v54 = vmul.f32 %v2452_v5, %v2452_v5  ;;  %v149_v1 = vld [vmem:[#allocation9 + $0x288] sm:$0xff] }
  0x62   :  { %469 = vadd.xlane.f32.xlu0 %v468_v7  ;;  %1306 = vmatpush.xpose.msrb.mxu0 %v2443_v14  ;;  %v301_v7 = vmul.f32 %v2457_v21, %v2457_v21  ;;  %v302_v14 = vmul.f32 %v174_v19, %v174_v19 }
  0x63   :  { %1347 = vmatpush.xpose.msrb.mxu2 %v2448_v16  ;;  %1326 = vmatpush.xpose.msrb.mxu1 %v2450_v9  ;;  %v2506_v9 = vld [vmem:[#allocation9 + $0x280] sm:$0xff] }
  0x65   :  { %1367 = vmatpush.xpose.msrb.mxu3 %v2454_v15 }
  0x66   :  { %1307 = vmatpush.xpose.msrb.mxu0 %v2461_v33 }
  0x67   :  { %1348 = vmatpush.xpose.msrb.mxu2 %v2472_v35  ;;  %1327 = vmatpush.xpose.msrb.mxu1 %v2474_v56 }
  0x68   :  { %430 = vadd.xlane.f32.xlu2 %v429_v2  ;;  %v2496_v2 = vld [vmem:[#allocation9 + $0x380] sm:$0xff] }
  0x69   :  { %475 = vadd.xlane.f32.xlu1 %v474_v20  ;;  %1368 = vmatpush.xpose.msrb.mxu3 %v2482_v13  ;;  %v2498_v20 = vld [vmem:[#allocation9 + $0x298] sm:$0xff] }
  0x6a   :  { %427 = vadd.xlane.f32.xlu0 %v426_v63  ;;  %v480_v63 = vadd.f32 %v301_v7, %v300_v54  ;;  %1308 = vmatpush.xpose.msrb.mxu0 %v2491_v4  ;;  %v272_v54 = vmul.f32 %v144_v47, %v144_v47  ;;  %v273_v7 = vmul.f32 %v145_v59, %v145_v59 }
  0x6b   :  { %1349 = vmatpush.xpose.msrb.mxu2 %v2496_v2  ;;  %1328 = vmatpush.xpose.msrb.mxu1 %v2498_v20 }
  0x6c   :  { %v438_v17 = vadd.f32 %v273_v7, %v272_v54  ;;  %v304_v54 = vmul.f32 %v176_v46, %v176_v46  ;;  %v305_v7 = vmul.f32 %v177_v24, %v177_v24 }
  0x6d   :  { %1369 = vmatpush.xpose.msrb.mxu3 %v2500_v10 }
  0x6e   :  { %1309 = vmatpush.xpose.msrb.mxu0 %v2506_v9 }
  0x6f   :  { %1350 = vmatpush.xpose.msrb.mxu2 %v178_v49  ;;  %1329 = vmatpush.xpose.msrb.mxu1 %v149_v1  ;;  %v3797_v49 = vld [vmem:[#allocation26_spill] sm:$0xff] }
  0x70   :  { %481 = vadd.xlane.f32.xlu2 %v480_v63  ;;  %v253_v63 = vmul.f32 %v2229_v3, %v2229_v3  ;;  %v275_v3 = vmul.f32 %v147_v61, %v147_v61 }
  0x71   :  { %433 = vadd.xlane.f32.xlu1 %v432_v8  ;;  %1370 = vmatpush.xpose.msrb.mxu3 %v179_v32  ;;  %v483_v8 = vadd.f32 %v303_v12, %v302_v14  ;;  %v254_v14 = vmul.f32 %v2212_v50, %v2212_v50  ;;  %v255_v12 = vmul.f32 %v2216_v51, %v2216_v51 }
  0x72   :  { %478 = vadd.xlane.f32.xlu0 %v477_v53  ;;  %1310 = vmatpush.xpose.msrb.mxu0 %v146_v40  ;;  %v435_v53 = vadd.f32 %v271_v48, %v270_v0  ;;  %v2513_v23 = vadd.f32 %v253_v63, %v252_v62  ;;  %v489_v62 = vadd.f32 %v307_v60, %v306_v29  ;;  %v2537_v29 = vld [vmem:[#allocation6 + $0x8] sm:$0xff]  ;;  %v3798_v63 = vld [vmem:[#allocation25_spill] sm:$0xff]  ;;  %v3800_v60 = vld [vmem:[#allocation27_spill] sm:$0xff] }
  0x73   :  { %1351 = vmatpush.xpose.msrb.mxu2 %v176_v46  ;;  %1330 = vmatpush.xpose.msrb.mxu1 %v147_v61  ;;  %v486_v32 = vadd.f32 %v305_v7, %v304_v54  ;;  %v308_v50 = vmul.f32 %v2496_v2, %v2496_v2  ;;  %v278_v51 = vmul.f32 %v2491_v4, %v2491_v4  ;;  %v3796_v2 = vld [vmem:[#allocation23_spill] sm:$0xff] }
  0x74   :  { %v257_v46 = vmul.f32 %v2192_v41, %v2192_v41  ;;  %v318_v61 = vmul.f32 %v2376_v18, %v2376_v18  ;;  %1298 = vmatmul.f32.vlgmr.msra.gmra.mxu3 %v2537_v29  ;;  %1258 = vmatmul.f32.vlgmr.msra.gmra.mxu1 %v2537_v29  ;;  %v3801_v7 = vld [vmem:[#allocation15_spill] sm:$0xff] }
  0x75   :  { %1371 = vmatpush.xpose.msrb.mxu3 %v177_v24  ;;  %v319_v24 = vmul.f32 %v2386_v43, %v2386_v43 }
  0x76   :  { %1311 = vmatpush.xpose.msrb.mxu0 %v144_v47  ;;  %v2520_v47 = vld [vmem:[#allocation6] sm:$0xff] }
  0x77   :  { %1352 = vmatpush.xpose.msrb.mxu2 %v174_v19  ;;  %1331 = vmatpush.xpose.msrb.mxu1 %v145_v59  ;;  %v2524_v19 = vadd.f32 %v255_v12, %v254_v14  ;;  %v277_v59 = vmul.f32 %v149_v1, %v149_v1 }
  0x78   :  { %439 = vadd.xlane.f32.xlu2 %v438_v17  ;;  %v441_v17 = vadd.f32 %v275_v3, %v274_v22  ;;  %1278 = vmatmul.f32.vlgmr.msra.gmra.mxu2 %v2520_v47  ;;  %v256_v22 = vmul.f32 %v2183_v37, %v2183_v37  ;;  %v286_v37 = vmul.f32 %v2395_v45, %v2395_v45 }
  0x79   :  { %484 = vadd.xlane.f32.xlu1 %v483_v8  ;;  %1372 = vmatpush.xpose.msrb.mxu3 %v175_v6  ;;  %v279_v6 = vmul.f32 %v2498_v20, %v2498_v20  ;;  %v312_v45 = vmul.f32 %v2448_v16, %v2448_v16  ;;  %v281_v16 = vmul.f32 %v2474_v56, %v2474_v56  ;;  %v3794_v56 = vld [vmem:[#allocation24_spill] sm:$0xff] }
  0x7a   :  { %436 = vadd.xlane.f32.xlu0 %v435_v53  ;;  %1312 = vmatpush.xpose.msrb.mxu0 %v142_v11  ;;  %v276_v11 = vmul.f32 %v2506_v9, %v2506_v9  ;;  %v3799_v8 = vld [vmem:[#allocation32_spill] sm:$0xff] }
  0x7b   :  { %1353 = vmatpush.xpose.msrb.mxu2 %v2452_v5  ;;  %1332 = vmatpush.xpose.msrb.mxu1 %v143_v58  ;;  %v309_v58 = vmul.f32 %v2500_v10, %v2500_v10  ;;  %v287_v10 = vmul.f32 %v2402_v52, %v2402_v52  ;;  %v447_v41 = vadd.f32 %v279_v6, %v278_v51  ;;  %v3804_v51 = vld [vmem:[#allocation36_spill] sm:$0xff] }
  0x7c   :  { %1238 = vmatmul.f32.vlgmr.msra.gmra.mxu0 %v2520_v47  ;;  %v444_v5 = vadd.f32 %v277_v59, %v276_v11  ;;  %v2570_v52 = vadd.f32 %v257_v46, %v256_v22  ;;  %v314_v53 = vmul.f32 %v3799_v8, %v3799_v8  ;;  %v283_v6 = vmul.f32 %v3804_v51, %v3804_v51  ;;  %v3805_v11 = vld [vmem:[#allocation17_spill] sm:$0xff]  ;;  %v3806_v22 = vld [vmem:[#allocation18_spill] sm:$0xff] }
  0x7d   :  { %1373 = vmatpush.xpose.msrb.mxu3 %v2457_v21  ;;  %v492_v43 = vadd.f32 %v309_v58, %v308_v50  ;;  %v313_v21 = vmul.f32 %v2454_v15, %v2454_v15  ;;  %v259_v15 = vmul.f32 %v2169_v28, %v2169_v28  ;;  %v322_v59 = vmul.f32 %v3805_v11, %v3805_v11 }
  0x7e   :  { %1313 = vmatpush.xpose.msrb.mxu0 %v2459_v26  ;;  %v310_v26 = vmul.f32 %v2472_v35, %v2472_v35  ;;  %v323_v46 = vmul.f32 %v3806_v22, %v3806_v22 }
  0x7f   :  { %1354 = vmatpush.xpose.msrb.mxu2 %v2465_v44  ;;  %1333 = vmatpush.xpose.msrb.mxu1 %v2463_v34  ;;  %v320_v34 = vmul.f32 %v2352_v42, %v2352_v42  ;;  %v498_v4 = vadd.f32 %v313_v21, %v312_v45 }
  0x80   :  { %490 = vadd.xlane.f32.xlu2 %v489_v62  ;;  %v3802_v62 = vld [vmem:[#allocation34_spill] sm:$0xff] }
  0x81   :  { %442 = vadd.xlane.f32.xlu1 %v441_v17  ;;  %1374 = vmatpush.xpose.msrb.mxu3 %v2467_v30  ;;  %v3793_v30 = vld [vmem:[#allocation21_spill] sm:$0xff]  ;;  %v315_v17 = vmul.f32 %v3802_v62, %v3802_v62 }
  0x82   :  { %487 = vadd.xlane.f32.xlu0 %v486_v32  ;;  %1314 = vmatpush.xpose.msrb.mxu0 %v2404_v57  ;;  %v2572_v57 = vadd.f32 %v319_v24, %v318_v61  ;;  %v321_v35 = vmul.f32 %v3793_v30, %v3793_v30  ;;  %v3803_v32 = vld [vmem:[#allocation35_spill] sm:$0xff]  ;;  %v3807_v24 = vld [vmem:[#allocation16_spill] sm:$0xff] }
  0x83   :  { %v2549_v40 = vpop.xlane.xlu2 %334  ;;  %1355 = vmatpush.xpose.msrb.mxu2 %v2411_v38  ;;  %1334 = vmatpush.xpose.msrb.mxu1 %v2409_v36  ;;  %v2579_v36 = vadd.f32 %v287_v10, %v286_v37  ;;  %v311_v38 = vmul.f32 %v2482_v13, %v2482_v13  ;;  %v282_v50 = vmul.f32 %v3803_v32, %v3803_v32  ;;  %v3808_v37 = vld [vmem:[#allocation19_spill] sm:$0xff] }
  0x84   :  { %v2557_v9 = vpop.xlane.xlu1 %328  ;;  %v510_v14 = vadd.f32 %v321_v35, %v320_v34  ;;  %v290_v10 = vmul.f32 %v3808_v37, %v3808_v37  ;;  %v501_v21 = vadd.f32 %v315_v17, %v314_v53  ;;  %v3811_v34 = vld [vmem:[#allocation30_spill] sm:$0xff]  ;;  %v3812_v30 = vld [vmem:[#allocation31_spill] sm:$0xff] }
  0x85   :  { %v52_v1 = vpop.xlane.xlu0 %51  ;;  %1375 = vmatpush.xpose.msrb.mxu3 %v2415_v55  ;;  %v280_v55 = vmul.f32 %v2461_v33, %v2461_v33  ;;  %v3792_v33 = vld [vmem:[#allocation22_spill] sm:$0xff]  ;;  %v495_v0 = vadd.f32 %v311_v38, %v310_v26  ;;  %v453_v26 = vadd.f32 %v283_v6, %v282_v50  ;;  %v284_v35 = vmul.f32 %v3812_v30, %v3812_v30 }
  0x86   :  { %v2561_v18 = vmax.f32 %v52_v1, 1e-24  ;;  %1315 = vmatpush.xpose.msrb.mxu0 %v2417_v39  ;;  %v258_v39 = vmul.f32 %v2167_v27, %v2167_v27  ;;  %v3809_v1 = vld [vmem:[#allocation20_spill] sm:$0xff] }
  0x87   :  { %1356 = vmatpush.xpose.msrb.mxu2 %v2355_v25  ;;  %1335 = vmatpush.xpose.msrb.mxu1 %v2419_v31  ;;  %v288_v25 = vmul.f32 %v3794_v56, %v3794_v56  ;;  %v3795_v31 = vld [vmem:[#allocation28_spill] sm:$0xff]  ;;  %v450_v20 = vadd.f32 %v281_v16, %v280_v55  ;;  %v3810_v55 = vld [vmem:[#allocation29_spill] sm:$0xff] }
  0x88   :  { %1851 = vrsqrt.f32 %v2561_v18  ;;  %448 = vadd.xlane.f32.xlu2 %v447_v41  ;;  %v289_v13 = vmul.f32 %v3795_v31, %v3795_v31  ;;  %v417_v3 = vadd.f32 %v259_v15, %v258_v39  ;;  %v291_v41 = vmul.f32 %v3809_v1, %v3809_v1  ;;  %v3813_v56 = vld [vmem:[#allocation33_spill] sm:$0xff] }
  0x89   :  { %493 = vadd.xlane.f32.xlu1 %v492_v43  ;;  %1376 = vmatpush.xpose.msrb.mxu3 %v3792_v33  ;;  %vm60_vm2 = vweird.f32 %v2561_v18  ;;  %v316_v16 = vmul.f32 %v3810_v55, %v3810_v55  ;;  %v317_v33 = vmul.f32 %v3811_v34, %v3811_v34 }
  0x8a   :  { %445 = vadd.xlane.f32.xlu0 %v444_v5  ;;  %1316 = vmatpush.xpose.msrb.mxu0 %v3796_v2  ;;  %v462_v12 = vadd.f32 %v289_v13, %v288_v25  ;;  %v465_v15 = vadd.f32 %v291_v41, %v290_v10 }
  0x8b   :  { %v2595_v44 = vpop.xlane.xlu2 %337  ;;  %1357 = vmatpush.xpose.msrb.mxu2 %v3797_v49  ;;  %1336 = vmatpush.xpose.msrb.mxu1 %v3798_v63 }
  0x8c   :  { %v2606_v28 = vpop.xlane.xlu1 %331 }
  0x8d   :  { %v2604_v27 = vpop.xlane.xlu0 %325  ;;  %1377 = vmatpush.xpose.msrb.mxu3 %v3800_v60 }
  0x8e   :  { %v1852_v42 = vpop.eup %1851  ;;  %1317 = vmatpush.xpose.msrb.mxu0 %v3801_v7  ;;  %1358 = vmatmul.f32.vlgmr.msrb.gmra.mxu2 %v2520_v47  ;;  %v516_v53 = vmax.f32 %v2604_v27, 1e-24  ;;  %v2689_v7 = vmax.f32 %v2557_v9, 1e-24  ;;  %v2702_v9 = vmax.f32 %v2606_v28, 1e-24 }
  0x8f   :  { %v55_v48 = vmul.f32 %v1852_v42, %v2561_v18  ;;  %1337 = vmatpush.xpose.msrb.mxu1 %v3807_v24  ;;  %vm61_vm0 = vweird.f32 %v1852_v42  ;;  %v285_v18 = vmul.f32 %v3813_v56, %v3813_v56 }
  0x90   :  { %499 = vadd.xlane.f32.xlu2 %v498_v4  ;;  %1378 = vmatmul.f32.vlgmr.msrb.gmra.mxu3 %v2537_v29  ;;  %vm62_vm3 = vmor %vm60_vm2, %vm61_vm0  ;;  %1853 = vrsqrt.f32 %v516_v53  ;;  %vm586_vm5 = vweird.f32 %v516_v53  ;;  %vm596_vm7 = vweird.f32 %v2689_v7  ;;  %vm606_vm15 = vweird.f32 %v2702_v9 }
  0x91   :  { %v56_v54 = vmul.f32 %v1852_v42, %v55_v48  ;;  %451 = vadd.xlane.f32.xlu1 %v450_v20  ;;  %1318 = vmatmul.f32.vlgmr.msrb.gmra.mxu0 %v2520_v47  ;;  %v513_v47 = vadd.f32 %v323_v46, %v322_v59  ;;  %v456_v13 = vadd.f32 %v285_v18, %v284_v35  ;;  %v3768_v20 = vmov 0  }
  0x92   :  { %496 = vadd.xlane.f32.xlu0 %v495_v0  ;;  %1338 = vmatmul.f32.vlgmr.msrb.gmra.mxu1 %v2537_v29  ;;  %1855 = vrsqrt.f32 %v2689_v7 }
  0x93   :  { %v57_v58 = vmul.f32 0.5, %v56_v54  ;;  %v2628_v61 = vpop.xlane.xlu2 %346  ;;  %1848 = vset.pattern.permute.xlu2 %v3768_v20 }
  0x94   :  { %v2638_v45 = vpop.xlane.xlu1 %343 }
  0x95   :  { %v58_v43 = vsub.f32 1.5, %v57_v58  ;;  %v2636_v5 = vpop.xlane.xlu0 %340  ;;  %v2707_v58 = vmax.f32 %v2549_v40, 1e-24 }
  0x97   :  { %v59_v38 = vmul.f32 %v1852_v42, %v58_v43 }
  0x98   :  { %409 = vadd.xlane.f32.xlu2 %v2513_v23  ;;  %v504_v23 = vadd.f32 %v317_v33, %v316_v16 }
  0x99   :  { %v63_v39 = vsel %vm62_vm3, %v1852_v42, %v59_v38  ;;  %502 = vadd.xlane.f32.xlu1 %v501_v21 }
  0x9a   :  { %65 = vst.msk [vmem:[#allocation3] sm:$0xff] %vm64_vm1, %v63_v39  ;;  %454 = vadd.xlane.f32.xlu0 %v453_v26 }
  0x9b   :  { %v2652_v29 = vpop.xlane.xlu2 %355 }
  0x9c   :  { %v2656_v31 = vpop.xlane.xlu1 %352 }
  0x9d   :  { %v2654_v25 = vpop.xlane.xlu0 %349 }
  0xa0   :  { %412 = vadd.xlane.f32.xlu2 %v2524_v19 }
  0xa1   :  { %505 = vadd.xlane.f32.xlu1 %v504_v23 }
  0xa2   :  { %457 = vadd.xlane.f32.xlu0 %v456_v13 }
  0xa3   :  { %v2659_v4 = vpop.xlane.xlu2 %364 }
  0xa4   :  { %v2663_v42 = vpop.xlane.xlu1 %361 }
  0xa5   :  { %v2661_v2 = vpop.xlane.xlu0 %358 }
  0xa8   :  { %415 = vadd.xlane.f32.xlu2 %v2570_v52 }
  0xa9   :  { %508 = vadd.xlane.f32.xlu1 %v2572_v57 }
  0xaa   :  { %460 = vadd.xlane.f32.xlu0 %v2579_v36 }
  0xab   :  { %v374_v0 = vpop.xlane.xlu2 %373 }
  0xac   :  { %v2671_v19 = vpop.xlane.xlu1 %370  ;;  %v2699_v51 = vmax.f32 %v374_v0, 1e-24 }
  0xad   :  { %v2669_v48 = vpop.xlane.xlu0 %367 }
  0xae   :  { %vm746_vm13 = vweird.f32 %v2699_v51 }
  0xb0   :  { %418 = vadd.xlane.f32.xlu2 %v417_v3 }
  0xb1   :  { %511 = vadd.xlane.f32.xlu1 %v510_v14  ;;  %v1382_v14 = vld [vmem:[#allocation3] sm:$0xff] }
  0xb2   :  { %463 = vadd.xlane.f32.xlu0 %v462_v12  ;;  %v1854_v12 = vpop.eup %1853 }
  0xb3   :  { %v2673_v49 = vpop.xlane.xlu2 %382  ;;  %v581_v50 = vmul.f32 %v1854_v12, %v516_v53  ;;  %v2704_v6 = vpop.eup %1855  ;;  %vm587_vm4 = vweird.f32 %v1854_v12 }
  0xb4   :  { %v380_v8 = vpop.xlane.xlu1 %379  ;;  %v591_v22 = vmul.f32 %v2704_v6, %v2689_v7  ;;  %vm588_vm6 = vmor %vm586_vm5, %vm587_vm4  ;;  %vm597_vm8 = vweird.f32 %v2704_v6  ;;  %v2781_v7 = vmax.f32 %v2673_v49, 1e-24 }
  0xb5   :  { %v377_v63 = vpop.xlane.xlu0 %376  ;;  %v582_v11 = vmul.f32 %v1854_v12, %v581_v50  ;;  %v2751_v18 = vmax.f32 %v380_v8, 1e-24  ;;  %vm2784_vm11 = vmor %vm596_vm7, %vm597_vm8  ;;  %vm616_vm7 = vweird.f32 %v2707_v58 }
  0xb6   :  { %v2720_v40 = vmax.f32 %v377_v63, 1e-24  ;;  %v592_v41 = vmul.f32 %v2704_v6, %v591_v22 }
  0xb7   :  { %v583_v37 = vmul.f32 0.5, %v582_v11 }
  0xb8   :  { %v593_v16 = vmul.f32 0.5, %v592_v41 }
  0xb9   :  { %514 = vadd.xlane.f32.xlu1 %v513_v47  ;;  %v584_v21 = vsub.f32 1.5, %v583_v37  ;;  %v2735_v47 = vmax.f32 %v2595_v44, 1e-24  ;;  %v2769_v37 = vmax.f32 %v2636_v5, 1e-24 }
  0xba   :  { %466 = vadd.xlane.f32.xlu0 %v465_v15 }
  0xbb   :  { %v2675_v52 = vpop.xlane.xlu2 %391  ;;  %v585_v30 = vmul.f32 %v1854_v12, %v584_v21 }
  0xbc   :  { %v2679_v36 = vpop.xlane.xlu1 %388 }
  0xbd   :  { %v2677_v57 = vpop.xlane.xlu0 %385  ;;  %v589_v8 = vsel %vm588_vm6, %v1854_v12, %v585_v30 }
  0xc3   :  { %v2682_v60 = vpop.xlane.xlu2 %400 }
  0xc4   :  { %v2686_v54 = vpop.xlane.xlu1 %397 }
  0xc5   :  { %v2684_v3 = vpop.xlane.xlu0 %394 }
  0xc8   :  { %1385 = vperm.xlu2 %1848, %v1382_v14   ;;  %v594_v14 = vsub.f32 1.5, %v593_v16 }
  0xcb   :  { %v422_v62 = vpop.xlane.xlu2 %421 }
  0xcc   :  { %v2692_v17 = vmax.f32 %v422_v62, 1e-24  ;;  %v2696_v27 = vpop.xlane.xlu1 %406 }
  0xcd   :  { %v2694_v32 = vpop.xlane.xlu0 %403 }
  0xce   :  { %1857 = vrsqrt.f32 %v2692_v17  ;;  %vm906_vm9 = vweird.f32 %v2692_v17 }
  0xcf   :  { %1859 = vrsqrt.f32 %v2699_v51 }
  0xd0   :  { %1861 = vrsqrt.f32 %v2702_v9 }
  0xd1   :  { %1863 = vrsqrt.f32 %v2707_v58 }
  0xd3   :  { %v2724_v1 = vpop.xlane.xlu2 %472 }
  0xd4   :  { %v2710_v59 = vpop.eup %1857  ;;  %v425_v24 = vpop.xlane.xlu1 %424 }
  0xd5   :  { %v2715_v46 = vpop.xlane.xlu0 %469  ;;  %v2718_v28 = vmax.f32 %v425_v24, 1e-24  ;;  %v901_v10 = vmul.f32 %v2710_v59, %v2692_v17  ;;  %v2728_v43 = vpop.eup %1859  ;;  %vm907_vm10 = vweird.f32 %v2710_v59 }
  0xd6   :  { %v2730_v26 = vpop.eup %1861  ;;  %v741_v39 = vmul.f32 %v2728_v43, %v2699_v51  ;;  %vm2803_vm12 = vmor %vm906_vm9, %vm907_vm10  ;;  %vm747_vm14 = vweird.f32 %v2728_v43 }
  0xd7   :  { %1865 = vrsqrt.f32 %v2718_v28  ;;  %v2732_v38 = vpop.eup %1863  ;;  %v902_v55 = vmul.f32 %v2710_v59, %v901_v10  ;;  %v601_v34 = vmul.f32 %v2730_v26, %v2702_v9  ;;  %vm607_vm0 = vweird.f32 %v2730_v26  ;;  %vm2834_vm3 = vmor %vm746_vm13, %vm747_vm14 }
  0xd8   :  { %1867 = vrsqrt.f32 %v2720_v40  ;;  %v611_v56 = vmul.f32 %v2732_v38, %v2707_v58  ;;  %v742_v0 = vmul.f32 %v2728_v43, %v741_v39  ;;  %vm916_vm2 = vweird.f32 %v2718_v28  ;;  %vm2845_vm5 = vmor %vm606_vm15, %vm607_vm0 }
  0xd9   :  { %1869 = vrsqrt.f32 %v2735_v47  ;;  %v903_v23 = vmul.f32 0.5, %v902_v55  ;;  %v602_v62 = vmul.f32 %v2730_v26, %v601_v34  ;;  %v595_v55 = vmul.f32 %v2704_v6, %v594_v14 }
  0xda   :  { %v612_v11 = vmul.f32 %v2732_v38, %v611_v56  ;;  %v743_v10 = vmul.f32 0.5, %v742_v0  ;;  %vm617_vm8 = vweird.f32 %v2732_v38  ;;  %vm626_vm14 = vweird.f32 %v2735_v47 }
  0xdb   :  { %v431_v50 = vpop.xlane.xlu2 %430  ;;  %v904_v53 = vsub.f32 1.5, %v903_v23  ;;  %v603_v21 = vmul.f32 0.5, %v602_v62  ;;  %vm2911_vm10 = vmor %vm616_vm7, %vm617_vm8  ;;  %vm766_vm15 = vweird.f32 %v2751_v18 }
  0xdc   :  { %v2745_v35 = vpop.xlane.xlu1 %475  ;;  %v2763_v22 = vmax.f32 %v431_v50, 1e-24  ;;  %v2788_v39 = vmul.f32 0.5, %v612_v11  ;;  %v744_v62 = vsub.f32 1.5, %v743_v10 }
  0xdd   :  { %v428_v15 = vpop.xlane.xlu0 %427  ;;  %v2747_v44 = vpop.eup %1865  ;;  %v905_v30 = vmul.f32 %v2710_v59, %v904_v53  ;;  %v604_v50 = vsub.f32 1.5, %v603_v21 }
  0xde   :  { %v2743_v33 = vmax.f32 %v428_v15, 1e-24  ;;  %v911_v13 = vmul.f32 %v2747_v44, %v2718_v28  ;;  %v2758_v63 = vpop.eup %1867  ;;  %v745_v10 = vmul.f32 %v2728_v43, %v744_v62  ;;  %vm917_vm4 = vweird.f32 %v2747_v44 }
  0xdf   :  { %v751_v12 = vmul.f32 %v2758_v63, %v2720_v40  ;;  %v2773_v41 = vpop.eup %1869  ;;  %v909_v53 = vsel %vm2803_vm12, %v2710_v59, %v905_v30  ;;  %v605_v59 = vmul.f32 %v2730_v26, %v604_v50  ;;  %vm2865_vm6 = vmor %vm916_vm2, %vm917_vm4  ;;  %v614_v50 = vsub.f32 1.5, %v2788_v39 }
  0xe0   :  { %1871 = vrsqrt.f32 %v2743_v33  ;;  %v912_v24 = vmul.f32 %v2747_v44, %v911_v13  ;;  %v621_v49 = vmul.f32 %v2773_v41, %v2735_v47  ;;  %v2798_v13 = vmax.f32 %v2638_v45, 1e-24 }
  0xe1   :  { %1873 = vrsqrt.f32 %v2751_v18  ;;  %v752_v0 = vmul.f32 %v2758_v63, %v751_v12  ;;  %v599_v45 = vsel %vm2784_vm11, %v2704_v6, %v595_v55  ;;  %v749_v9 = vsel %vm2834_vm3, %v2728_v43, %v745_v10 }
  0xe2   :  { %1875 = vrsqrt.f32 %v2763_v22  ;;  %v913_v15 = vmul.f32 0.5, %v912_v24  ;;  %v622_v5 = vmul.f32 %v2773_v41, %v621_v49  ;;  %v2876_v43 = vmax.f32 %v2628_v61, 1e-24 }
  0xe3   :  { %1392 = vxpose.xlu0.b32.start [1/16] (narrow) %v589_v8, 8  ;;  %1877 = vrsqrt.f32 %v2769_v37  ;;  %v753_v6 = vmul.f32 0.5, %v752_v0  ;;  %v2854_v0 = vpop.xlane.xlu2 %481  ;;  %v2880_v28 = vmax.f32 %v2679_v36, 1e-24  ;;  %v615_v55 = vmul.f32 %v2732_v38, %v614_v50 }
  0xe4   :  { %v434_v56 = vpop.xlane.xlu1 %433  ;;  %1879 = vrsqrt.f32 %v2781_v7  ;;  %v914_v11 = vsub.f32 1.5, %v913_v15  ;;  %v2841_v15 = vmax.f32 %v2677_v57, 1e-24  ;;  %v623_v20 = vmul.f32 0.5, %v622_v5 }
  0xe5   :  { %v2790_v34 = vpop.xlane.xlu0 %478  ;;  %v2816_v17 = vmax.f32 %v434_v56, 1e-24  ;;  %1881 = vrsqrt.f32 %v2798_v13  ;;  %vm757_vm9 = vweird.f32 %v2758_v63  ;;  %vm756_vm11 = vweird.f32 %v2720_v40 }
  0xe6   :  { %v2778_v16 = vpop.eup %1871  ;;  %v915_v49 = vmul.f32 %v2747_v44, %v914_v11  ;;  %v609_v11 = vsel %vm2845_vm5, %v2730_v26, %v605_v59  ;;  %v624_v30 = vsub.f32 1.5, %v623_v20  ;;  %vm758_vm12 = vmor %vm756_vm11, %vm757_vm9  ;;  %vm926_vm2 = vweird.f32 %v2743_v33 }
  0xe7   :  { %v2793_v23 = vpop.eup %1873  ;;  %v921_v8 = vmul.f32 %v2778_v16, %v2743_v33  ;;  %1883 = vrsqrt.f32 %v2816_v17  ;;  %vm927_vm13 = vweird.f32 %v2778_v16  ;;  %vm627_vm3 = vweird.f32 %v2773_v41 }
  0xe8   :  { %v2823_v24 = vpop.eup %1875  ;;  %v761_v12 = vmul.f32 %v2793_v23, %v2751_v18  ;;  %1885 = vrsqrt.f32 %v2841_v15  ;;  %vm767_vm0 = vweird.f32 %v2793_v23  ;;  %vm928_vm4 = vmor %vm926_vm2, %vm927_vm13  ;;  %vm936_vm5 = vweird.f32 %v2763_v22 }
  0xe9   :  { %v922_v21 = vmul.f32 %v2778_v16, %v921_v8  ;;  %v2850_v51 = vpop.eup %1877  ;;  %v931_v56 = vmul.f32 %v2823_v24, %v2763_v22  ;;  %v754_v8 = vsub.f32 1.5, %v753_v6  ;;  %v919_v6 = vsel %vm2865_vm6, %v2747_v44, %v915_v49  ;;  %vm2958_vm6 = vmor %vm766_vm15, %vm767_vm0 }
  0xea   :  { %v2857_v57 = vpop.eup %1879  ;;  %v762_v14 = vmul.f32 %v2793_v23, %v761_v12  ;;  %v631_v61 = vmul.f32 %v2850_v51, %v2769_v37  ;;  %1887 = vrsqrt.f32 %v2876_v43  ;;  %vm937_vm7 = vweird.f32 %v2823_v24  ;;  %vm628_vm8 = vmor %vm626_vm14, %vm627_vm3 }
  0xeb   :  { %1393 = vxpose.xlu0.b32.cont [2/16] (narrow) %v599_v45, 8  ;;  %v923_v45 = vmul.f32 0.5, %v922_v21  ;;  %v2873_v12 = vpop.eup %1881  ;;  %v932_v39 = vmul.f32 %v2823_v24, %v931_v56  ;;  %v771_v36 = vmul.f32 %v2857_v57, %v2781_v7  ;;  %v755_v44 = vmul.f32 %v2758_v63, %v754_v8  ;;  %v440_v58 = vpop.xlane.xlu2 %439  ;;  %vm2980_vm9 = vmor %vm936_vm5, %vm937_vm7 }
  0xec   :  { %v763_v10 = vmul.f32 0.5, %v762_v14  ;;  %v2899_v5 = vpop.xlane.xlu1 %484  ;;  %v2903_v56 = vmax.f32 %v2654_v25, 1e-24  ;;  %v641_v49 = vmul.f32 %v2873_v12, %v2798_v13  ;;  %1889 = vrsqrt.f32 %v2880_v28 }
  0xed   :  { %v2888_v26 = vpop.eup %1883  ;;  %v924_v59 = vsub.f32 1.5, %v923_v45  ;;  %v933_v20 = vmul.f32 0.5, %v932_v39  ;;  %v632_v62 = vmul.f32 %v2850_v51, %v631_v61  ;;  %v772_v50 = vmul.f32 %v2857_v57, %v771_v36 }
  0xee   :  { %1456 = vxpose.xlu2.b32.start [1/16] (narrow) %v909_v53, 8  ;;  %v437_v53 = vpop.xlane.xlu0 %436  ;;  %v2919_v25 = vpop.eup %1885  ;;  %v764_v8 = vsub.f32 1.5, %v763_v10  ;;  %v619_v45 = vsel %vm2911_vm10, %v2732_v38, %v615_v55  ;;  %vm776_vm10 = vweird.f32 %v2781_v7  ;;  %vm777_vm11 = vweird.f32 %v2857_v57 }
  0xef   :  { %v2894_v21 = vmax.f32 %v437_v53, 1e-24  ;;  %v759_v53 = vsel %vm758_vm12, %v2758_v63, %v755_v44  ;;  %v925_v40 = vmul.f32 %v2778_v16, %v924_v59  ;;  %v934_v39 = vsub.f32 1.5, %v933_v20  ;;  %vm3012_vm14 = vmor %vm776_vm10, %vm777_vm11 }
  0xf0   :  { %v2942_v63 = vpop.eup %1887  ;;  %v633_v61 = vmul.f32 0.5, %v632_v62  ;;  %v773_v36 = vmul.f32 0.5, %v772_v50  ;;  %v781_v10 = vmul.f32 %v2919_v25, %v2841_v15  ;;  %v765_v59 = vmul.f32 %v2793_v23, %v764_v8 }
  0xf1   :  { %1891 = vrsqrt.f32 %v2894_v21  ;;  %v929_v55 = vsel %vm928_vm4, %v2778_v16, %v925_v40  ;;  %v625_v44 = vmul.f32 %v2773_v41, %v624_v30  ;;  %v2971_v16 = vmax.f32 %v2675_v52, 1e-24 }
  0xf2   :  { %v2949_v33 = vpop.eup %1889  ;;  %v935_v30 = vmul.f32 %v2823_v24, %v934_v39  ;;  %v634_v62 = vsub.f32 1.5, %v633_v61  ;;  %v642_v50 = vmul.f32 %v2873_v12, %v641_v49  ;;  %v774_v8 = vsub.f32 1.5, %v773_v36 }
  0xf3   :  { %1394 = vxpose.xlu0.b32.cont [3/16] (narrow) %v609_v11, 8  ;;  %1424 = vxpose.xlu1.b32.start [1/16] (narrow) %v749_v9, 8  ;;  %v941_v9 = vmul.f32 %v2888_v26, %v2816_v17  ;;  %v2932_v11 = vmax.f32 %v440_v58, 1e-24  ;;  %v769_v58 = vsel %vm2958_vm6, %v2793_v23, %v765_v59  ;;  %v782_v52 = vmul.f32 %v2919_v25, %v781_v10 }
  0xf4   :  { %v629_v49 = vsel %vm628_vm8, %v2773_v41, %v625_v44  ;;  %v939_v40 = vsel %vm2980_vm9, %v2823_v24, %v935_v30  ;;  %vm637_vm12 = vweird.f32 %v2850_v51  ;;  %v643_v39 = vmul.f32 0.5, %v642_v50  ;;  %v3027_v30 = vpop.xlane.xlu2 %490 }
  0xf5   :  { %v942_v38 = vmul.f32 %v2888_v26, %v941_v9  ;;  %1893 = vrsqrt.f32 %v2932_v11  ;;  %v443_v9 = vpop.xlane.xlu1 %442  ;;  %v635_v61 = vmul.f32 %v2850_v51, %v634_v62  ;;  %v775_v36 = vmul.f32 %v2857_v57, %v774_v8 }
  0xf6   :  { %1457 = vxpose.xlu2.b32.cont [2/16] (narrow) %v919_v6, 8  ;;  %v2938_v6 = vpop.xlane.xlu0 %487  ;;  %1895 = vrsqrt.f32 %v2903_v56  ;;  %v2993_v22 = vmax.f32 %v443_v9, 1e-24  ;;  %v783_v10 = vmul.f32 0.5, %v782_v52  ;;  %vm946_vm13 = vweird.f32 %v2816_v17 }
  0xf7   :  { %v2963_v20 = vpop.eup %1891  ;;  %v943_v18 = vmul.f32 0.5, %v942_v38  ;;  %1897 = vrsqrt.f32 %v2971_v16  ;;  %v791_v38 = vmul.f32 %v2949_v33, %v2880_v28  ;;  %vm947_vm15 = vweird.f32 %v2888_v26 }
  0xf8   :  { %v3019_v14 = vmax.f32 %v2656_v31, 1e-24  ;;  %vm636_vm0 = vweird.f32 %v2769_v37  ;;  %1899 = vrsqrt.f32 %v2993_v22  ;;  %v3037_v62 = vmax.f32 %v2652_v29, 1e-24  ;;  %vm3047_vm3 = vmor %vm946_vm13, %vm947_vm15 }
  0xf9   :  { %v944_v23 = vsub.f32 1.5, %v943_v18  ;;  %vm3031_vm2 = vmor %vm636_vm0, %vm637_vm12  ;;  %v644_v37 = vsub.f32 1.5, %v643_v39  ;;  %v792_v50 = vmul.f32 %v2949_v33, %v791_v38  ;;  %v779_v8 = vsel %vm3012_vm14, %v2857_v57, %v775_v36 }
  0xfa   :  { %v784_v52 = vsub.f32 1.5, %v783_v10  ;;  %v3054_v29 = vmax.f32 %v2684_v3, 1e-24  ;;  %1901 = vrsqrt.f32 %v3019_v14  ;;  %v3063_v17 = vmax.f32 %v2686_v54, 1e-24 }
  0xfb   :  { %1395 = vxpose.xlu0.b32.cont [4/16] (narrow) %v619_v45, 8  ;;  %1425 = vxpose.xlu1.b32.cont [2/16] (narrow) %v759_v53, 8  ;;  %v951_v45 = vmul.f32 %v2963_v20, %v2894_v21  ;;  %v651_v53 = vmul.f32 %v2942_v63, %v2876_v43  ;;  %v3000_v41 = vpop.eup %1893  ;;  %v945_v31 = vmul.f32 %v2888_v26, %v944_v23  ;;  %vm646_vm4 = vweird.f32 %v2798_v13 }
  0xfc   :  { %v3023_v18 = vpop.eup %1895  ;;  %v961_v7 = vmul.f32 %v3000_v41, %v2932_v11  ;;  %vm647_vm5 = vweird.f32 %v2873_v12  ;;  %v793_v39 = vmul.f32 0.5, %v792_v50  ;;  %vm787_vm6 = vweird.f32 %v2919_v25 }
  0xfd   :  { %v952_v59 = vmul.f32 %v2963_v20, %v951_v45  ;;  %v652_v44 = vmul.f32 %v2942_v63, %v651_v53  ;;  %v3051_v47 = vpop.eup %1897  ;;  %v661_v53 = vmul.f32 %v3023_v18, %v2903_v56  ;;  %v949_v3 = vsel %vm3047_vm3, %v2888_v26, %v945_v31  ;;  %v3081_v36 = vpop.xlane.xlu1 %493  ;;  %vm3091_vm7 = vmor %vm646_vm4, %vm647_vm5 }
  0xfe   :  { %1458 = vxpose.xlu2.b32.cont [3/16] (narrow) %v929_v55, 8  ;;  %v446_v55 = vpop.xlane.xlu0 %445  ;;  %v962_v23 = vmul.f32 %v3000_v41, %v961_v7  ;;  %1903 = vrsqrt.f32 %v3054_v29  ;;  %v785_v26 = vmul.f32 %v2919_v25, %v784_v52  ;;  %vm786_vm8 = vweird.f32 %v2841_v15 }
  0xff   :  { %v953_v45 = vmul.f32 0.5, %v952_v59  ;;  %v653_v57 = vmul.f32 0.5, %v652_v44  ;;  %v3075_v54 = vmax.f32 %v446_v55, 1e-24  ;;  %1905 = vrsqrt.f32 %v3037_v62  ;;  %vm788_vm9 = vmor %vm786_vm8, %vm787_vm6 }
 0x100   :  { %v3085_v59 = vmax.f32 %v2661_v2, 1e-24  ;;  %1907 = vrsqrt.f32 %v3063_v17  ;;  %v963_v24 = vmul.f32 0.5, %v962_v23  ;;  %v662_v9 = vmul.f32 %v3023_v18, %v661_v53 }
 0x101   :  { %v954_v38 = vsub.f32 1.5, %v953_v45  ;;  %v654_v10 = vsub.f32 1.5, %v653_v57  ;;  %v794_v31 = vsub.f32 1.5, %v793_v39  ;;  %1909 = vrsqrt.f32 %v3075_v54 }
 0x102   :  { %vm957_vm10 = vweird.f32 %v2963_v20  ;;  %vm656_vm11 = vweird.f32 %v2876_v43  ;;  %vm796_vm12 = vweird.f32 %v2880_v28  ;;  %vm797_vm13 = vweird.f32 %v2949_v33 }
 0x103   :  { %1396 = vxpose.xlu0.b32.cont [5/16] (narrow) %v629_v49, 8  ;;  %1426 = vxpose.xlu1.b32.cont [3/16] (narrow) %v769_v58, 8  ;;  %v639_v49 = vsel %vm3031_vm2, %v2850_v51, %v635_v61  ;;  %v3071_v51 = vpop.eup %1899  ;;  %v645_v61 = vmul.f32 %v2873_v12, %v644_v37  ;;  %v449_v37 = vpop.xlane.xlu2 %448  ;;  %v955_v15 = vmul.f32 %v2963_v20, %v954_v38  ;;  %v964_v45 = vsub.f32 1.5, %v963_v24  ;;  %vm3140_vm3 = vmor %vm796_vm12, %vm797_vm13 }
 0x104   :  { %v971_v7 = vmul.f32 %v3071_v51, %v2993_v22  ;;  %v3101_v2 = vpop.eup %1901  ;;  %v3114_v58 = vmax.f32 %v449_v37, 1e-24  ;;  %vm956_vm14 = vweird.f32 %v2894_v21  ;;  %vm657_vm15 = vweird.f32 %v2942_v63 }
 0x105   :  { %v649_v50 = vsel %vm3091_vm7, %v2873_v12, %v645_v61  ;;  %v3119_v52 = vpop.eup %1903  ;;  %v671_v57 = vmul.f32 %v3101_v2, %v3019_v14  ;;  %vm958_vm0 = vmor %vm956_vm14, %vm957_vm10  ;;  %v795_v23 = vmul.f32 %v2949_v33, %v794_v31  ;;  %vm966_vm2 = vweird.f32 %v2932_v11  ;;  %v452_v24 = vpop.xlane.xlu1 %451 }
 0x106   :  { %1459 = vxpose.xlu2.b32.cont [4/16] (narrow) %v939_v40, 8  ;;  %v801_v40 = vmul.f32 %v3051_v47, %v2971_v16  ;;  %v3096_v44 = vpop.xlane.xlu0 %496  ;;  %v972_v12 = vmul.f32 %v3071_v51, %v971_v7  ;;  %v959_v21 = vsel %vm958_vm0, %v2963_v20, %v955_v15  ;;  %vm967_vm4 = vweird.f32 %v3000_v41  ;;  %vm3154_vm5 = vmor %vm656_vm11, %vm657_vm15 }
 0x107   :  { %v811_v61 = vmul.f32 %v3119_v52, %v3054_v29  ;;  %1911 = vrsqrt.f32 %v3114_v58  ;;  %v3159_v20 = vmax.f32 %v2663_v42, 1e-24  ;;  %v965_v55 = vmul.f32 %v3000_v41, %v964_v45  ;;  %vm3174_vm6 = vmor %vm966_vm2, %vm967_vm4 }
 0x108   :  { %v802_v13 = vmul.f32 %v3051_v47, %v801_v40  ;;  %v655_v40 = vmul.f32 %v2942_v63, %v654_v10  ;;  %v973_v10 = vmul.f32 0.5, %v972_v12  ;;  %1913 = vrsqrt.f32 %v3085_v59 }
 0x109   :  { %v672_v7 = vmul.f32 %v3101_v2, %v671_v57  ;;  %v799_v43 = vsel %vm3140_vm3, %v2949_v33, %v795_v23  ;;  %vm806_vm7 = vweird.f32 %v2971_v16  ;;  %vm807_vm8 = vweird.f32 %v3051_v47 }
 0x10a   :  { %v803_v53 = vmul.f32 0.5, %v802_v13  ;;  %v659_v33 = vsel %vm3154_vm5, %v2942_v63, %v655_v40  ;;  %v3188_v11 = vmax.f32 %v452_v24, 1e-24  ;;  %v969_v15 = vsel %vm3174_vm6, %v3000_v41, %v965_v55  ;;  %vm3208_vm11 = vmor %vm806_vm7, %vm807_vm8 }
 0x10b   :  { %1397 = vxpose.xlu0.b32.cont [6/16] (narrow) %v639_v49, 8  ;;  %1427 = vxpose.xlu1.b32.cont [4/16] (narrow) %v779_v8, 8  ;;  %v789_v8 = vsel %vm788_vm9, %v2919_v25, %v785_v26  ;;  %v3124_v25 = vpop.eup %1905  ;;  %v663_v49 = vmul.f32 0.5, %v662_v9  ;;  %v3162_v26 = vmax.f32 %v2682_v60, 1e-24  ;;  %vm667_vm9 = vweird.f32 %v3023_v18  ;;  %v3216_v39 = vpop.xlane.xlu2 %499 }
 0x10c   :  { %v804_v9 = vsub.f32 1.5, %v803_v53  ;;  %v681_v60 = vmul.f32 %v3124_v25, %v3037_v62  ;;  %v673_v45 = vmul.f32 0.5, %v672_v7  ;;  %vm976_vm10 = vweird.f32 %v2993_v22 }
 0x10d   :  { %v664_v13 = vsub.f32 1.5, %v663_v49  ;;  %1915 = vrsqrt.f32 %v3162_v26  ;;  %vm977_vm12 = vweird.f32 %v3071_v51  ;;  %vm666_vm13 = vweird.f32 %v2903_v56 }
 0x10e   :  { %1460 = vxpose.xlu2.b32.cont [5/16] (narrow) %v949_v3, 8  ;;  %v3131_v3 = vpop.eup %1907  ;;  %v455_v37 = vpop.xlane.xlu0 %454  ;;  %1917 = vrsqrt.f32 %v3159_v20  ;;  %v805_v49 = vmul.f32 %v3051_v47, %v804_v9  ;;  %vm3224_vm14 = vmor %vm666_vm13, %vm667_vm9  ;;  %v674_v55 = vsub.f32 1.5, %v673_v45  ;;  %vm676_vm0 = vweird.f32 %v3019_v14 }
 0x10f   :  { %v3145_v38 = vpop.eup %1909  ;;  %v821_v12 = vmul.f32 %v3131_v3, %v3063_v17  ;;  %v665_v53 = vmul.f32 %v3023_v18, %v664_v13  ;;  %1919 = vrsqrt.f32 %v3188_v11  ;;  %vm3240_vm15 = vmor %vm976_vm10, %vm977_vm12  ;;  %v3257_v13 = vmax.f32 %v2669_v48, 1e-24 }
 0x110   :  { %v981_v31 = vmul.f32 %v3145_v38, %v3075_v54  ;;  %v3195_v63 = vpop.eup %1911  ;;  %v809_v56 = vsel %vm3208_vm11, %v3051_v47, %v805_v49  ;;  %vm677_vm2 = vweird.f32 %v3101_v2  ;;  %vm817_vm4 = vweird.f32 %v3119_v52 }
 0x111   :  { %v3213_v23 = vpop.eup %1913  ;;  %v991_v16 = vmul.f32 %v3195_v63, %v3114_v58  ;;  %v822_v24 = vmul.f32 %v3131_v3, %v821_v12  ;;  %v669_v47 = vsel %vm3224_vm14, %v3023_v18, %v665_v53  ;;  %vm3276_vm3 = vmor %vm676_vm0, %vm677_vm2  ;;  %vm816_vm5 = vweird.f32 %v3054_v29 }
 0x112   :  { %v982_v57 = vmul.f32 %v3145_v38, %v981_v31  ;;  %vm818_vm6 = vmor %vm816_vm5, %vm817_vm4  ;;  %vm987_vm7 = vweird.f32 %v3145_v38  ;;  %vm986_vm8 = vweird.f32 %v3075_v54  ;;  %vm826_vm9 = vweird.f32 %v3063_v17 }
 0x113   :  { %1398 = vxpose.xlu0.b32.cont [7/16] (narrow) %v649_v50, 8  ;;  %1428 = vxpose.xlu1.b32.cont [5/16] (narrow) %v789_v8, 8  ;;  %v812_v50 = vmul.f32 %v3119_v52, %v811_v61  ;;  %v974_v8 = vsub.f32 1.5, %v973_v10  ;;  %v3230_v10 = vmax.f32 %v2659_v4, 1e-24  ;;  %v3244_v9 = vpop.eup %1915  ;;  %v691_v4 = vmul.f32 %v3213_v23, %v3085_v59  ;;  %v410_v61 = vpop.xlane.xlu2 %409  ;;  %vm988_vm13 = vmor %vm986_vm8, %vm987_vm7 }
 0x114   :  { %v983_v42 = vmul.f32 0.5, %v982_v57  ;;  %v831_v48 = vmul.f32 %v3244_v9, %v3162_v26  ;;  %vm827_vm10 = vweird.f32 %v3131_v3  ;;  %vm686_vm11 = vweird.f32 %v3037_v62 }
 0x115   :  { %v813_v40 = vmul.f32 0.5, %v812_v50  ;;  %v975_v28 = vmul.f32 %v3071_v51, %v974_v8  ;;  %1921 = vrsqrt.f32 %v3230_v10  ;;  %v823_v8 = vmul.f32 0.5, %v822_v24 }
 0x116   :  { %1461 = vxpose.xlu2.b32.cont [6/16] (narrow) %v959_v21, 8  ;;  %v682_v21 = vmul.f32 %v3124_v25, %v681_v60  ;;  %v3254_v60 = vpop.eup %1917  ;;  %v458_v50 = vpop.xlane.xlu0 %457  ;;  %v692_v45 = vmul.f32 %v3213_v23, %v691_v4  ;;  %v984_v12 = vsub.f32 1.5, %v983_v42  ;;  %vm687_vm12 = vweird.f32 %v3124_v25 }
 0x117   :  { %v814_v31 = vsub.f32 1.5, %v813_v40  ;;  %v3265_v18 = vpop.eup %1919  ;;  %v824_v40 = vsub.f32 1.5, %v823_v8  ;;  %vm996_vm14 = vweird.f32 %v3114_v58  ;;  %vm997_vm0 = vweird.f32 %v3195_v63  ;;  %vm3342_vm2 = vmor %vm686_vm11, %vm687_vm12 }
 0x118   :  { %v683_v22 = vmul.f32 0.5, %v682_v21  ;;  %v1001_v41 = vmul.f32 %v3265_v18, %v3188_v11  ;;  %v832_v21 = vmul.f32 %v3244_v9, %v831_v48  ;;  %v985_v24 = vmul.f32 %v3145_v38, %v984_v12 }
 0x119   :  { %v815_v57 = vmul.f32 %v3119_v52, %v814_v31  ;;  %v3336_v48 = vmax.f32 %v410_v61, 1e-24  ;;  %v3349_v8 = vmax.f32 %v2671_v19, 1e-24  ;;  %vm697_vm4 = vweird.f32 %v3213_v23 }
 0x11a   :  { %v684_v14 = vsub.f32 1.5, %v683_v22  ;;  %v833_v42 = vmul.f32 0.5, %v832_v21  ;;  %v989_v31 = vsel %vm988_vm13, %v3145_v38, %v985_v24  ;;  %vm836_vm5 = vweird.f32 %v3162_v26 }
 0x11b   :  { %1399 = vxpose.xlu0.b32.cont [8/16] (narrow) %v659_v33, 8  ;;  %1429 = vxpose.xlu1.b32.cont [6/16] (narrow) %v799_v43, 8  ;;  %v3249_v43 = vmax.f32 %v2694_v32, 1e-24  ;;  %v992_v33 = vmul.f32 %v3195_v63, %v991_v16  ;;  %v979_v32 = vsel %vm3240_vm15, %v3071_v51, %v975_v28  ;;  %v675_v51 = vmul.f32 %v3101_v2, %v674_v55  ;;  %v3299_v29 = vpop.eup %1921  ;;  %vm3327_vm15 = vmor %vm826_vm9, %vm827_vm10  ;;  %v413_v58 = vpop.xlane.xlu2 %412 }
 0x11c   :  { %v3289_v16 = vmax.f32 %v2696_v27, 1e-24  ;;  %v3292_v28 = vmul.f32 0.5, %v692_v45  ;;  %v819_v27 = vsel %vm818_vm6, %v3119_v52, %v815_v57  ;;  %v3313_v52 = vmax.f32 %v458_v50, 1e-24 }
 0x11d   :  { %1923 = vrsqrt.f32 %v3249_v43  ;;  %v993_v53 = vmul.f32 0.5, %v992_v33  ;;  %v679_v55 = vsel %vm3276_vm3, %v3101_v2, %v675_v51  ;;  %v1002_v2 = vmul.f32 %v3265_v18, %v1001_v41  ;;  %vm3359_vm3 = vmor %vm996_vm14, %vm997_vm0 }
 0x11e   :  { %1462 = vxpose.xlu2.b32.cont [7/16] (narrow) %v969_v15, 8  ;;  %v3270_v15 = vmax.f32 %v455_v37, 1e-24  ;;  %1925 = vrsqrt.f32 %v3257_v13  ;;  %v701_v37 = vmul.f32 %v3254_v60, %v3159_v20  ;;  %v461_v22 = vpop.xlane.xlu0 %460  ;;  %v685_v33 = vmul.f32 %v3124_v25, %v684_v14 }
 0x11f   :  { %v994_v7 = vsub.f32 1.5, %v993_v53  ;;  %v711_v38 = vmul.f32 %v3299_v29, %v3230_v10  ;;  %v1003_v45 = vmul.f32 0.5, %v1002_v2  ;;  %v834_v14 = vsub.f32 1.5, %v833_v42 }
 0x120   :  { %1927 = vrsqrt.f32 %v3270_v15  ;;  %v702_v51 = vmul.f32 %v3254_v60, %v701_v37  ;;  %v694_v19 = vsub.f32 1.5, %v3292_v28  ;;  %v689_v37 = vsel %vm3342_vm2, %v3124_v25, %v685_v33 }
 0x121   :  { %1929 = vrsqrt.f32 %v3289_v16  ;;  %v995_v12 = vmul.f32 %v3195_v63, %v994_v7  ;;  %vm837_vm6 = vweird.f32 %v3244_v9  ;;  %v712_v41 = vmul.f32 %v3299_v29, %v711_v38 }
 0x122   :  { %1931 = vrsqrt.f32 %v3313_v52  ;;  %v1004_v21 = vsub.f32 1.5, %v1003_v45  ;;  %v703_v61 = vmul.f32 0.5, %v702_v51  ;;  %v3383_v28 = vmax.f32 %v461_v22, 1e-24  ;;  %vm3389_vm8 = vmor %vm836_vm5, %vm837_vm6 }
 0x123   :  { %1400 = vxpose.xlu0.b32.cont [9/16] (narrow) %v669_v47, 8  ;;  %1430 = vxpose.xlu1.b32.cont [7/16] (narrow) %v809_v56, 8  ;;  %v3305_v56 = vpop.eup %1923  ;;  %v825_v47 = vmul.f32 %v3131_v3, %v824_v40  ;;  %1933 = vrsqrt.f32 %v3336_v48  ;;  %v999_v25 = vsel %vm3359_vm3, %v3195_v63, %v995_v12  ;;  %v835_v26 = vmul.f32 %v3244_v9, %v834_v14  ;;  %v416_v49 = vpop.xlane.xlu2 %415 }
 0x124   :  { %v3310_v4 = vpop.eup %1925  ;;  %1935 = vrsqrt.f32 %v3349_v8  ;;  %vm1006_vm7 = vweird.f32 %v3188_v11  ;;  %v695_v24 = vmul.f32 %v3213_v23, %v694_v19  ;;  %vm1007_vm9 = vweird.f32 %v3265_v18 }
 0x125   :  { %v829_v62 = vsel %vm3327_vm15, %v3131_v3, %v825_v47  ;;  %v721_v40 = vmul.f32 %v3310_v4, %v3257_v13  ;;  %vm696_vm10 = vweird.f32 %v3085_v59  ;;  %v3399_v42 = vmax.f32 %v413_v58, 1e-24  ;;  %vm3414_vm12 = vmor %vm1006_vm7, %vm1007_vm9 }
 0x126   :  { %1463 = vxpose.xlu2.b32.cont [8/16] (narrow) %v979_v32, 8  ;;  %v3332_v54 = vpop.eup %1927  ;;  %v841_v32 = vmul.f32 %v3305_v56, %v3249_v43  ;;  %v464_v47 = vpop.xlane.xlu0 %463  ;;  %vm698_vm11 = vmor %vm696_vm10, %vm697_vm4  ;;  %v1005_v22 = vmul.f32 %v3265_v18, %v1004_v21  ;;  %v713_v33 = vmul.f32 0.5, %v712_v41  ;;  %v704_v50 = vsub.f32 1.5, %v703_v61 }
 0x127   :  { %v1011_v57 = vmul.f32 %v3332_v54, %v3270_v15  ;;  %v3370_v53 = vpop.eup %1929  ;;  %1937 = vrsqrt.f32 %v3383_v28  ;;  %v722_v38 = vmul.f32 %v3310_v4, %v721_v40  ;;  %v699_v51 = vsel %vm698_vm11, %v3213_v23, %v695_v24 }
 0x128   :  { %v842_v3 = vmul.f32 %v3305_v56, %v841_v32  ;;  %v3394_v63 = vpop.eup %1931  ;;  %v851_v2 = vmul.f32 %v3370_v53, %v3289_v16  ;;  %v839_v32 = vsel %vm3389_vm8, %v3244_v9, %v835_v26  ;;  %vm706_vm13 = vweird.f32 %v3159_v20 }
 0x129   :  { %v1021_v12 = vmul.f32 %v3394_v63, %v3313_v52  ;;  %vm707_vm14 = vweird.f32 %v3254_v60  ;;  %v3428_v11 = vmax.f32 %v2715_v46, 1e-24  ;;  %1939 = vrsqrt.f32 %v3399_v42 }
 0x12a   :  { %v843_v7 = vmul.f32 0.5, %v842_v3  ;;  %v852_v9 = vmul.f32 %v3370_v53, %v851_v2  ;;  %v1009_v23 = vsel %vm3414_vm12, %v3265_v18, %v1005_v22  ;;  %v3436_v19 = vmax.f32 %v464_v47, 1e-24  ;;  %vm3440_vm15 = vmor %vm706_vm13, %vm707_vm14 }
 0x12b   :  { %1401 = vxpose.xlu0.b32.cont [10/16] (narrow) %v679_v55, 8  ;;  %1431 = vxpose.xlu1.b32.cont [8/16] (narrow) %v819_v27, 8  ;;  %v1012_v55 = vmul.f32 %v3332_v54, %v1011_v57  ;;  %v705_v20 = vmul.f32 %v3254_v60, %v704_v50  ;;  %v714_v57 = vsub.f32 1.5, %v713_v33  ;;  %v1022_v46 = vmul.f32 %v3394_v63, %v1021_v12  ;;  %v419_v12 = vpop.xlane.xlu2 %418 }
 0x12c   :  { %v844_v14 = vsub.f32 1.5, %v843_v7  ;;  %v853_v21 = vmul.f32 0.5, %v852_v9  ;;  %vm847_vm0 = vweird.f32 %v3305_v56  ;;  %1941 = vrsqrt.f32 %v3428_v11 }
 0x12d   :  { %v1013_v45 = vmul.f32 0.5, %v1012_v55  ;;  %v3454_v61 = vmax.f32 %v416_v49, 1e-24  ;;  %v3457_v26 = vmax.f32 %v2724_v1, 1e-24  ;;  %1943 = vrsqrt.f32 %v3436_v19 }
 0x12e   :  { %1464 = vxpose.xlu2.b32.cont [9/16] (narrow) %v989_v31, 8  ;;  %v3404_v31 = vpop.eup %1933  ;;  %v845_v18 = vmul.f32 %v3305_v56, %v844_v14  ;;  %v709_v55 = vsel %vm3440_vm15, %v3254_v60, %v705_v20  ;;  %vm846_vm2 = vweird.f32 %v3249_v43  ;;  %v1023_v27 = vmul.f32 0.5, %v1022_v46  ;;  %v467_v2 = vpop.xlane.xlu0 %466 }
 0x12f   :  { %v3418_v17 = vpop.eup %1935  ;;  %vm848_vm3 = vmor %vm846_vm2, %vm847_vm0  ;;  %vm1017_vm4 = vweird.f32 %v3332_v54  ;;  %v854_v1 = vsub.f32 1.5, %v853_v21  ;;  %vm716_vm5 = vweird.f32 %v3230_v10  ;;  %vm717_vm6 = vweird.f32 %v3299_v29 }
 0x130   :  { %v3444_v58 = vpop.eup %1937  ;;  %v731_v41 = vmul.f32 %v3418_v17, %v3349_v8  ;;  %v849_v22 = vsel %vm848_vm3, %v3305_v56, %v845_v18  ;;  %vm1016_vm7 = vweird.f32 %v3270_v15  ;;  %1945 = vrsqrt.f32 %v3454_v61  ;;  %vm3490_vm11 = vmor %vm716_vm5, %vm717_vm6 }
 0x131   :  { %v3464_v24 = vpop.eup %1939  ;;  %v1031_v7 = vmul.f32 %v3444_v58, %v3383_v28  ;;  %v715_v60 = vmul.f32 %v3299_v29, %v714_v57  ;;  %v3478_v50 = vmax.f32 %v467_v2, 1e-24  ;;  %vm1018_vm8 = vmor %vm1016_vm7, %vm1017_vm4  ;;  %vm856_vm9 = vweird.f32 %v3289_v16 }
 0x132   :  { %v871_v33 = vmul.f32 %v3464_v24, %v3399_v42  ;;  %vm857_vm10 = vweird.f32 %v3370_v53  ;;  %v3482_v56 = vpop.eup %1941  ;;  %v732_v9 = vmul.f32 %v3418_v17, %v731_v41  ;;  %1947 = vrsqrt.f32 %v3457_v26 }
 0x133   :  { %1402 = vxpose.xlu0.b32.cont [11/16] (narrow) %v689_v37, 8  ;;  %1432 = vxpose.xlu1.b32.cont [9/16] (narrow) %v829_v62, 8  ;;  %v861_v62 = vmul.f32 %v3404_v31, %v3336_v48  ;;  %v1014_v37 = vsub.f32 1.5, %v1013_v45  ;;  %v1032_v15 = vmul.f32 %v3444_v58, %v1031_v7  ;;  %v3494_v45 = vpop.eup %1943  ;;  %vm3504_vm12 = vmor %vm856_vm9, %vm857_vm10  ;;  %1949 = vrsqrt.f32 %v3478_v50 }
 0x134   :  { %v719_v49 = vsel %vm3490_vm11, %v3299_v29, %v715_v60  ;;  %vm1027_vm13 = vweird.f32 %v3394_v63  ;;  %vm727_vm14 = vweird.f32 %v3310_v4  ;;  %vm866_vm15 = vweird.f32 %v3336_v48 }
 0x135   :  { %v862_v40 = vmul.f32 %v3404_v31, %v861_v62  ;;  %v1015_v47 = vmul.f32 %v3332_v54, %v1014_v37  ;;  %v1033_v57 = vmul.f32 0.5, %v1032_v15  ;;  %v1041_v37 = vmul.f32 %v3494_v45, %v3436_v19 }
 0x136   :  { %1465 = vxpose.xlu2.b32.cont [10/16] (narrow) %v999_v25, 8  ;;  %v3450_v25 = vmul.f32 0.5, %v722_v38  ;;  %v3513_v20 = vpop.eup %1945  ;;  %vm867_vm0 = vweird.f32 %v3404_v31  ;;  %v733_v29 = vmul.f32 0.5, %v732_v9  ;;  %vm1026_vm2 = vweird.f32 %v3313_v52 }
 0x137   :  { %v863_v43 = vmul.f32 0.5, %v862_v40  ;;  %v1019_v59 = vsel %vm1018_vm8, %v3332_v54, %v1015_v47  ;;  %v3500_v54 = vmax.f32 %v419_v12, 1e-24  ;;  %v1061_v41 = vmul.f32 %v3482_v56, %v3428_v11  ;;  %vm1028_vm3 = vmor %vm1026_vm2, %vm1027_vm13 }
 0x138   :  { %v724_v14 = vsub.f32 1.5, %v3450_v25  ;;  %v3533_v25 = vpop.eup %1947  ;;  %v1034_v40 = vsub.f32 1.5, %v1033_v57  ;;  %v1042_v52 = vmul.f32 %v3494_v45, %v1041_v37  ;;  %vm726_vm4 = vweird.f32 %v3257_v13  ;;  %vm3542_vm5 = vmor %vm866_vm15, %vm867_vm0 }
 0x139   :  { %v864_v62 = vsub.f32 1.5, %v863_v43  ;;  %1951 = vrsqrt.f32 %v3500_v54  ;;  %v3546_v7 = vpop.eup %1949  ;;  %vm728_vm6 = vmor %vm726_vm4, %vm727_vm14  ;;  %v734_v2 = vsub.f32 1.5, %v733_v29  ;;  %v3551_v47 = vmax.f32 %v2745_v35, 1e-24 }
 0x13a   :  { %v725_v3 = vmul.f32 %v3310_v4, %v724_v14  ;;  %v1043_v60 = vmul.f32 0.5, %v1042_v52  ;;  %v1035_v35 = vmul.f32 %v3444_v58, %v1034_v40  ;;  %vm1037_vm7 = vweird.f32 %v3444_v58 }
 0x13b   :  { %1403 = vxpose.xlu0.b32.cont [12/16] (narrow) %v699_v51, 8  ;;  %1433 = vxpose.xlu1.b32.cont [10/16] (narrow) %v839_v32, 8  ;;  %v1024_v32 = vsub.f32 1.5, %v1023_v27  ;;  %v855_v51 = vmul.f32 %v3370_v53, %v854_v1  ;;  %v865_v18 = vmul.f32 %v3404_v31, %v864_v62  ;;  %vm876_vm8 = vweird.f32 %v3399_v42 }
 0x13c   :  { %v729_v13 = vsel %vm728_vm6, %v3310_v4, %v725_v3  ;;  %v1071_v4 = vmul.f32 %v3533_v25, %v3457_v26  ;;  %vm877_vm9 = vweird.f32 %v3464_v24  ;;  %1953 = vrsqrt.f32 %v3551_v47 }
 0x13d   :  { %v1025_v16 = vmul.f32 %v3394_v63, %v1024_v32  ;;  %v859_v46 = vsel %vm3504_vm12, %v3370_v53, %v855_v51  ;;  %v881_v53 = vmul.f32 %v3513_v20, %v3454_v61  ;;  %vm1036_vm10 = vweird.f32 %v3383_v28  ;;  %vm3583_vm14 = vmor %vm876_vm8, %vm877_vm9 }
 0x13e   :  { %1466 = vxpose.xlu2.b32.cont [11/16] (narrow) %v1009_v23, 8  ;;  %v872_v23 = vmul.f32 %v3464_v24, %v871_v33  ;;  %v1051_v33 = vmul.f32 %v3546_v7, %v3478_v50  ;;  %vm736_vm11 = vweird.f32 %v3349_v8  ;;  %vm737_vm12 = vweird.f32 %v3418_v17  ;;  %vm1038_vm13 = vmor %vm1036_vm10, %vm1037_vm7 }
 0x13f   :  { %v882_v48 = vmul.f32 %v3513_v20, %v881_v53  ;;  %v3559_v43 = vpop.eup %1951  ;;  %v1044_v38 = vsub.f32 1.5, %v1043_v60  ;;  %v1039_v51 = vsel %vm1038_vm13, %v3444_v58, %v1035_v35  ;;  %v735_v28 = vmul.f32 %v3418_v17, %v734_v2  ;;  %vm738_vm15 = vmor %vm736_vm11, %vm737_vm12 }
 0x140   :  { %v873_v21 = vmul.f32 0.5, %v872_v23  ;;  %v891_v32 = vmul.f32 %v3559_v43, %v3500_v54  ;;  %v1052_v12 = vmul.f32 %v3546_v7, %v1051_v33  ;;  %v1072_v14 = vmul.f32 %v3533_v25, %v1071_v4 }
 0x141   :  { %v3589_v9 = vmax.f32 %v2790_v34, 1e-24  ;;  %v739_v57 = vsel %vm738_vm15, %v3418_v17, %v735_v28  ;;  %v1045_v37 = vmul.f32 %v3494_v45, %v1044_v38  ;;  %vm1047_vm0 = vweird.f32 %v3494_v45 }
 0x142   :  { %v874_v1 = vsub.f32 1.5, %v873_v21  ;;  %v892_v58 = vmul.f32 %v3559_v43, %v891_v32  ;;  %v3595_v42 = vpop.eup %1953  ;;  %vm886_vm2 = vweird.f32 %v3454_v61  ;;  %v1073_v34 = vmul.f32 0.5, %v1072_v14 }
 0x143   :  { %1404 = vxpose.xlu0.b32.cont [13/16] (narrow) %v709_v55, 8  ;;  %1434 = vxpose.xlu1.b32.cont [11/16] (narrow) %v849_v22, 8  ;;  %v1029_v55 = vsel %vm1028_vm3, %v3394_v63, %v1025_v16  ;;  %v1062_v63 = vmul.f32 %v3482_v56, %v1061_v41  ;;  %v869_v22 = vsel %vm3542_vm5, %v3404_v31, %v865_v18  ;;  %v883_v31 = vmul.f32 0.5, %v882_v48 }
 0x144   :  { %v875_v15 = vmul.f32 %v3464_v24, %v874_v1  ;;  %vm887_vm3 = vweird.f32 %v3513_v20  ;;  %vm1046_vm4 = vweird.f32 %v3436_v19  ;;  %1955 = vrsqrt.f32 %v3589_v9 }
 0x145   :  { %v884_v10 = vsub.f32 1.5, %v883_v31  ;;  %vm1048_vm5 = vmor %vm1046_vm4, %vm1047_vm0  ;;  %vm1067_vm6 = vweird.f32 %v3482_v56  ;;  %v1081_v16 = vmul.f32 %v3595_v42, %v3551_v47  ;;  %vm1066_vm8 = vweird.f32 %v3428_v11 }
 0x146   :  { %1467 = vxpose.xlu2.b32.cont [12/16] (narrow) %v1019_v59, 8  ;;  %v1063_v59 = vmul.f32 0.5, %v1062_v63  ;;  %v879_v62 = vsel %vm3583_vm14, %v3464_v24, %v875_v15  ;;  %v893_v24 = vmul.f32 0.5, %v892_v58  ;;  %v1049_v61 = vsel %vm1048_vm5, %v3494_v45, %v1045_v37  ;;  %vm3610_vm7 = vmor %vm886_vm2, %vm887_vm3  ;;  %v503_v37 = vpop.xlane.xlu1 %502 }
 0x147   :  { %v885_v17 = vmul.f32 %v3513_v20, %v884_v10  ;;  %v1074_v19 = vsub.f32 1.5, %v1073_v34  ;;  %v3616_v41 = vmax.f32 %v2854_v0, 1e-24  ;;  %vm1068_vm9 = vmor %vm1066_vm8, %vm1067_vm6  ;;  %v1082_v45 = vmul.f32 %v3595_v42, %v1081_v16 }
 0x148   :  { %v1064_v23 = vsub.f32 1.5, %v1063_v59  ;;  %v894_v21 = vsub.f32 1.5, %v893_v24  ;;  %vm1057_vm10 = vweird.f32 %v3546_v7  ;;  %vm896_vm11 = vweird.f32 %v3500_v54 }
 0x149   :  { %v889_v53 = vsel %vm3610_vm7, %v3513_v20, %v885_v17  ;;  %vm897_vm12 = vweird.f32 %v3559_v43  ;;  %vm1056_vm13 = vweird.f32 %v3478_v50  ;;  %vm1076_vm14 = vweird.f32 %v3457_v26 }
 0x14a   :  { %v1065_v29 = vmul.f32 %v3482_v56, %v1064_v23  ;;  %v1956_v52 = vpop.eup %1955  ;;  %vm1077_vm15 = vweird.f32 %v3533_v25  ;;  %1957 = vrsqrt.f32 %v3616_v41  ;;  %vm1058_vm0 = vmor %vm1056_vm13, %vm1057_vm10  ;;  %v895_v0 = vmul.f32 %v3559_v43, %v894_v21 }
 0x14b   :  { %1405 = vxpose.xlu0.b32.cont [14/16] (narrow) %v719_v49, 8  ;;  %1435 = vxpose.xlu1.b32.cont [12/16] (narrow) %v859_v46, 8  ;;  %v1053_v49 = vmul.f32 0.5, %v1052_v12  ;;  %v1091_v11 = vmul.f32 %v1956_v52, %v3589_v9  ;;  %v1075_v54 = vmul.f32 %v3533_v25, %v1074_v19  ;;  %vm898_vm2 = vmor %vm896_vm11, %vm897_vm12  ;;  %v569_v50 = vmax.f32 %v2899_v5, 1e-24 }
 0x14c   :  { %v1069_v18 = vsel %vm1068_vm9, %v3482_v56, %v1065_v29  ;;  %v1083_v56 = vmul.f32 0.5, %v1082_v45  ;;  %vm1078_vm3 = vmor %vm1076_vm14, %vm1077_vm15  ;;  %v899_v26 = vsel %vm898_vm2, %v3559_v43, %v895_v0  ;;  %vm1086_vm4 = vweird.f32 %v3551_v47 }
 0x14d   :  { %v1054_v46 = vsub.f32 1.5, %v1053_v49  ;;  %v1079_v2 = vsel %vm1078_vm3, %v3533_v25, %v1075_v54  ;;  %vm1087_vm5 = vweird.f32 %v3595_v42  ;;  %1959 = vrsqrt.f32 %v569_v50 }
 0x14e   :  { %1468 = vxpose.xlu2.b32.cont [13/16] (narrow) %v1029_v55, 8  ;;  %v1092_v55 = vmul.f32 %v1956_v52, %v1091_v11  ;;  %v1084_v27 = vsub.f32 1.5, %v1083_v56  ;;  %vm1088_vm6 = vmor %vm1086_vm4, %vm1087_vm5  ;;  %v570_v5 = vmax.f32 %v2938_v6, 1e-24  ;;  %vm1097_vm7 = vweird.f32 %v1956_v52  ;;  %v506_v19 = vpop.xlane.xlu1 %505 }
 0x14f   :  { %v1055_v40 = vmul.f32 %v3546_v7, %v1054_v46  ;;  %vm1096_vm8 = vweird.f32 %v3589_v9  ;;  %v571_v35 = vmax.f32 %v3027_v30, 1e-24  ;;  %vm1106_vm10 = vweird.f32 %v3616_v41 }
 0x150   :  { %v1093_v63 = vmul.f32 0.5, %v1092_v55  ;;  %v1085_v1 = vmul.f32 %v3595_v42, %v1084_v27  ;;  %1961 = vrsqrt.f32 %v570_v5  ;;  %vm1098_vm9 = vmor %vm1096_vm8, %vm1097_vm7  ;;  %v572_v12 = vmax.f32 %v3081_v36, 1e-24 }
 0x151   :  { %v1059_v20 = vsel %vm1058_vm0, %v3546_v7, %v1055_v40  ;;  %1963 = vrsqrt.f32 %v571_v35  ;;  %vm1116_vm13 = vweird.f32 %v569_v50  ;;  %v573_v58 = vmax.f32 %v3096_v44, 1e-24 }
 0x152   :  { %v1089_v25 = vsel %vm1088_vm6, %v3595_v42, %v1085_v1  ;;  %1965 = vrsqrt.f32 %v572_v12  ;;  %vm1126_vm2 = vweird.f32 %v570_v5  ;;  %v574_v24 = vmax.f32 %v3216_v39, 1e-24 }
 0x153   :  { %1406 = vxpose.xlu0.b32.cont [15/16] (narrow) %v729_v13, 8  ;;  %1436 = vxpose.xlu1.b32.cont [13/16] (narrow) %v869_v22, 8  ;;  %v1958_v13 = vpop.eup %1957  ;;  %v1094_v22 = vsub.f32 1.5, %v1093_v63  ;;  %1967 = vrsqrt.f32 %v573_v58  ;;  %vm1136_vm4 = vweird.f32 %v571_v35  ;;  %vm1146_vm7 = vweird.f32 %v572_v12 }
 0x154   :  { %v1101_v7 = vmul.f32 %v1958_v13, %v3616_v41  ;;  %v1960_v43 = vpop.eup %1959  ;;  %vm1107_vm11 = vweird.f32 %v1958_v13  ;;  %1969 = vrsqrt.f32 %v574_v24  ;;  %v575_v41 = vmax.f32 %v503_v37, 1e-24 }
 0x155   :  { %v1111_v47 = vmul.f32 %v1960_v43, %v569_v50  ;;  %v1095_v33 = vmul.f32 %v1956_v52, %v1094_v22  ;;  %vm1108_vm12 = vmor %vm1106_vm10, %vm1107_vm11  ;;  %vm1117_vm14 = vweird.f32 %v1960_v43  ;;  %v576_v0 = vmax.f32 %v506_v19, 1e-24 }
 0x156   :  { %1469 = vxpose.xlu2.b32.cont [14/16] (narrow) %v1039_v51, 8  ;;  %v1102_v48 = vmul.f32 %v1958_v13, %v1101_v7  ;;  %v1962_v6 = vpop.eup %1961  ;;  %vm1118_vm15 = vmor %vm1116_vm13, %vm1117_vm14  ;;  %1971 = vrsqrt.f32 %v575_v41  ;;  %vm1156_vm11 = vweird.f32 %v573_v58  ;;  %vm1166_vm13 = vweird.f32 %v574_v24 }
 0x157   :  { %v1112_v31 = vmul.f32 %v1960_v43, %v1111_v47  ;;  %v1099_v32 = vsel %vm1098_vm9, %v1956_v52, %v1095_v33  ;;  %v1121_v15 = vmul.f32 %v1962_v6, %v570_v5  ;;  %v1964_v30 = vpop.eup %1963  ;;  %vm1127_vm0 = vweird.f32 %v1962_v6 }
 0x158   :  { %v1103_v60 = vmul.f32 0.5, %v1102_v48  ;;  %v1131_v14 = vmul.f32 %v1964_v30, %v571_v35  ;;  %v1966_v49 = vpop.eup %1965  ;;  %vm1128_vm3 = vmor %vm1126_vm2, %vm1127_vm0  ;;  %vm1137_vm5 = vweird.f32 %v1964_v30  ;;  %1973 = vrsqrt.f32 %v576_v0 }
 0x159   :  { %v1113_v59 = vmul.f32 0.5, %v1112_v31  ;;  %v1122_v51 = vmul.f32 %v1962_v6, %v1121_v15  ;;  %vm1138_vm6 = vmor %vm1136_vm4, %vm1137_vm5  ;;  %vm1147_vm8 = vweird.f32 %v1966_v49  ;;  %v1259_v31 = vpop.f32.mrf.mxu1  ;;  %vm1176_vm0 = vweird.f32 %v575_v41 }
 0x15a   :  { %v1104_v4 = vsub.f32 1.5, %v1103_v60  ;;  %vm1148_vm9 = vmor %vm1146_vm7, %vm1147_vm8  ;;  %vm1186_vm4 = vweird.f32 %v576_v0 }
 0x15b   :  { %1407 = vxpose.xlu0.b32.end [16/16] (narrow) %v739_v57, 8  ;;  %1437 = vxpose.xlu1.b32.cont [14/16] (narrow) %v879_v62, 8  ;;  %v1114_v28 = vsub.f32 1.5, %v1113_v59  ;;  %v1123_v9 = vmul.f32 0.5, %v1122_v51  ;;  %v1132_v62 = vmul.f32 %v1964_v30, %v1131_v14  ;;  %v1141_v57 = vmul.f32 %v1966_v49, %v572_v12  ;;  %v1279_v14 = vpop.f32.mrf.mxu2 }
 0x15c   :  { %v1105_v38 = vmul.f32 %v1958_v13, %v1104_v4  ;;  %v1239_v4 = vpop.f32.mrf.mxu0 }
 0x15d   :  { %v1115_v10 = vmul.f32 %v1960_v43, %v1114_v28  ;;  %v1124_v23 = vsub.f32 1.5, %v1123_v9  ;;  %v1133_v36 = vmul.f32 0.5, %v1132_v62  ;;  %v1142_v16 = vmul.f32 %v1966_v49, %v1141_v57 }
 0x15e   :  { %1470 = vxpose.xlu2.b32.cont [15/16] (narrow) %v1049_v61, 8  ;;  %v1109_v8 = vsel %vm1108_vm12, %v1958_v13, %v1105_v38  ;;  %v1968_v61 = vpop.eup %1967  ;;  %v3657_v38 = vpop.permute.xlu2 %1385 }
 0x15f   :  { %v1119_v42 = vsel %vm1118_vm15, %v1960_v43, %v1115_v10  ;;  %v1125_v34 = vmul.f32 %v1962_v6, %v1124_v23  ;;  %v1134_v17 = vsub.f32 1.5, %v1133_v36  ;;  %v1151_v44 = vmul.f32 %v1968_v61, %v573_v58 }
 0x160   :  { %v1143_v29 = vmul.f32 0.5, %v1142_v16  ;;  %vm1157_vm10 = vweird.f32 %v1968_v61  ;;  %v3874_v36 = vmov 0  }
 0x161   :  { %v1129_v46 = vsel %vm1128_vm3, %v1962_v6, %v1125_v34  ;;  %v1135_v3 = vmul.f32 %v1964_v30, %v1134_v17  ;;  %v1152_v21 = vmul.f32 %v1968_v61, %v1151_v44  ;;  %vm1158_vm12 = vmor %vm1156_vm11, %vm1157_vm10  ;;  %v1339_v10 = vpop.f32.mrf.mxu1  ;;  %v1260_v34 = vadd.f32 %v1259_v31, %v1239_v4 }
 0x163   :  { %1488 = vxpose.xlu0.b32.start [1/16] (narrow) %v1069_v18, 8  ;;  %1438 = vxpose.xlu1.b32.cont [15/16] (narrow) %v889_v53, 8  ;;  %v1144_v53 = vsub.f32 1.5, %v1143_v29  ;;  %v1139_v45 = vsel %vm1138_vm6, %v1964_v30, %v1135_v3  ;;  %v1970_v18 = vpop.eup %1969  ;;  %v1153_v40 = vmul.f32 0.5, %v1152_v21  ;;  %v1388_v21 = vmul.f32 %v3657_v38, %v1260_v34 }
 0x164   :  { %v1161_v39 = vmul.f32 %v1970_v18, %v574_v24  ;;  %v1972_v50 = vpop.eup %1971  ;;  %vm1167_vm14 = vweird.f32 %v1970_v18  ;;  %v1319_v9 = vpop.f32.mrf.mxu0 }
 0x165   :  { %v1145_v52 = vmul.f32 %v1966_v49, %v1144_v53  ;;  %v1154_v56 = vsub.f32 1.5, %v1153_v40  ;;  %v1171_v55 = vmul.f32 %v1972_v50, %v575_v41  ;;  %v1974_v1 = vpop.eup %1973  ;;  %vm1168_vm15 = vmor %vm1166_vm13, %vm1167_vm14  ;;  %vm1177_vm2 = vweird.f32 %v1972_v50 }
 0x166   :  { %1471 = vxpose.xlu2.b32.end [16/16] (narrow) %v1059_v20, 8  ;;  %v1162_v11 = vmul.f32 %v1970_v18, %v1161_v39  ;;  %v509_v20 = vpop.xlane.xlu1 %508  ;;  %v1181_v22 = vmul.f32 %v1974_v1, %v576_v0  ;;  %vm1178_vm3 = vmor %vm1176_vm0, %vm1177_vm2  ;;  %vm1187_vm5 = vweird.f32 %v1974_v1  ;;  %v1340_v24 = vadd.f32 %v1339_v10, %v1319_v9 }
 0x167   :  { %v1149_v54 = vsel %vm1148_vm9, %v1966_v49, %v1145_v52  ;;  %v1155_v27 = vmul.f32 %v1968_v61, %v1154_v56  ;;  %v1172_v7 = vmul.f32 %v1972_v50, %v1171_v55  ;;  %vm1188_vm6 = vmor %vm1186_vm4, %vm1187_vm5 }
 0x168   :  { %v1182_v47 = vmul.f32 %v1974_v1, %v1181_v22  ;;  %v1390_v53 = vmul.f32 %v3657_v38, %v1340_v24 }
 0x169   :  { %v1159_v63 = vsel %vm1158_vm12, %v1968_v61, %v1155_v27  ;;  %v1173_v48 = vmul.f32 0.5, %v1172_v7 }
 0x16b   :  { %1489 = vxpose.xlu0.b32.cont [2/16] (narrow) %v1079_v2, 8  ;;  %1439 = vxpose.xlu1.b32.end [16/16] (narrow) %v899_v26, 8  ;;  %v1163_v26 = vmul.f32 0.5, %v1162_v11  ;;  %v3650_v2 = vmax.f32 %v509_v20, 1e-24  ;;  %v1174_v60 = vsub.f32 1.5, %v1173_v48 }
 0x16d   :  { %v1164_v13 = vsub.f32 1.5, %v1163_v26  ;;  %1975 = vrsqrt.f32 %v3650_v2  ;;  %v1175_v59 = vmul.f32 %v1972_v50, %v1174_v60  ;;  %vm1196_vm7 = vweird.f32 %v3650_v2 }
 0x16e   :  { %v512_v5 = vpop.xlane.xlu1 %511 }
 0x16f   :  { %v3653_v43 = vmax.f32 %v512_v5, 1e-24 }
 0x171   :  { %1977 = vrsqrt.f32 %v3653_v43  ;;  %vm1206_vm10 = vweird.f32 %v3653_v43 }
 0x173   :  { %1490 = vxpose.xlu0.b32.cont [3/16] (narrow) %v1089_v25, 8  ;;  %v1165_v25 = vmul.f32 %v1970_v18, %v1164_v13  ;;  %v1976_v35 = vpop.eup %1975 }
 0x174   :  { %v1191_v6 = vmul.f32 %v1976_v35, %v3650_v2  ;;  %vm1197_vm8 = vweird.f32 %v1976_v35 }
 0x175   :  { %v1169_v33 = vsel %vm1168_vm15, %v1970_v18, %v1165_v25  ;;  %vm1198_vm9 = vmor %vm1196_vm7, %vm1197_vm8 }
 0x176   :  { %v515_v15 = vpop.xlane.xlu1 %514  ;;  %v1192_v28 = vmul.f32 %v1976_v35, %v1191_v6 }
 0x177   :  { %v3659_v12 = vmax.f32 %v515_v15, 1e-24  ;;  %v1978_v30 = vpop.eup %1977 }
 0x178   :  { %v1193_v58 = vmul.f32 0.5, %v1192_v28  ;;  %v1201_v62 = vmul.f32 %v1978_v30, %v3653_v43  ;;  %vm1207_vm11 = vweird.f32 %v1978_v30 }
 0x179   :  { %1979 = vrsqrt.f32 %v3659_v12  ;;  %vm1208_vm12 = vmor %vm1206_vm10, %vm1207_vm11  ;;  %vm1216_vm13 = vweird.f32 %v3659_v12 }
 0x17a   :  { %v1194_v16 = vsub.f32 1.5, %v1193_v58 }
 0x17b   :  { %1491 = vxpose.xlu0.b32.cont [4/16] (narrow) %v1099_v32, 8  ;;  %v1183_v32 = vmul.f32 0.5, %v1182_v47 }
 0x17c   :  { %v1195_v40 = vmul.f32 %v1976_v35, %v1194_v16 }
 0x17d   :  { %v1184_v51 = vsub.f32 1.5, %v1183_v32 }
 0x17f   :  { %v1185_v23 = vmul.f32 %v1974_v1, %v1184_v51  ;;  %v1980_v29 = vpop.eup %1979 }
 0x180   :  { %v1211_v18 = vmul.f32 %v1980_v29, %v3659_v12  ;;  %vm1217_vm14 = vweird.f32 %v1980_v29 }
 0x181   :  { %v1189_v44 = vsel %vm1188_vm6, %v1974_v1, %v1185_v23  ;;  %vm1218_vm15 = vmor %vm1216_vm13, %vm1217_vm14 }
 0x182   :  { %v1212_v56 = vmul.f32 %v1980_v29, %v1211_v18 }
 0x183   :  { %1492 = vxpose.xlu0.b32.cont [5/16] (narrow) %v1109_v8, 8  ;;  %v1179_v8 = vsel %vm1178_vm3, %v1972_v50, %v1175_v59 }
 0x184   :  { %v1213_v55 = vmul.f32 0.5, %v1212_v56 }
 0x187   :  { %v1408_v37 = vpop.trf.xlu0  ;;  %v1472_v17 = vpop.trf.xlu2 }
 0x188   :  { %v1520_v3 = vperm.slane %v1408_v37, 0  ;;  %v1522_v19 = vperm.slane %v1472_v17, 0 }
 0x18a   :  { %v3671_v52 = vmul.f32 %v1520_v3, %v1388_v21  ;;  %v3673_v0 = vmul.f32 %v1522_v19, %v1390_v53  ;;  %v1359_v3 = vpop.f32.mrf.mxu2 }
 0x18b   :  { %1493 = vxpose.xlu0.b32.cont [6/16] (narrow) %v1119_v42, 8  ;;  %v1299_v42 = vpop.f32.mrf.mxu3 }
 0x18c   :  { %v1300_v57 = vadd.f32 %v1299_v42, %v1279_v14  ;;  %v1528_v50 = vmul.f32 %v3671_v52, %v3671_v52  ;;  %v1530_v26 = vmul.f32 %v3673_v0, %v3673_v0 }
 0x18e   :  { %v1389_v41 = vmul.f32 %v3657_v38, %v1300_v57  ;;  %v1532_v13 = vsub.f32 1.0, %v1528_v50  ;;  %v1534_v7 = vsub.f32 1.0, %v1530_v26  ;;  %v1596_v50 = vrot.slane %v3671_v52, 4 }
 0x18f   :  { %v1608_v26 = vrot.slane %v3673_v0, 4 }
 0x190   :  { %v1536_v48 = vmax.f32 %v1532_v13, 0.0  ;;  %v1538_v22 = vmax.f32 %v1534_v7, 0.0 }
 0x192   :  { %vm1547_vm2 = vcmp.eq.f32.partialorder %v1536_v48, inf  ;;  %vm1571_vm3 = vcmp.eq.f32.partialorder %v1538_v22, inf  ;;  %v1550_v37 = vand.u32 2147483648, %v1536_v48  ;;  %vm1549_vm5 = vcmp.eq.f32.partialorder %v1536_v48, 0.0 }
 0x193   :  { %1494 = vxpose.xlu0.b32.cont [7/16] (narrow) %v1129_v46, 8  ;;  %v1202_v46 = vmul.f32 %v1978_v30, %v1201_v62  ;;  %v1574_v17 = vand.u32 2147483648, %v1538_v22  ;;  %vm1573_vm6 = vcmp.eq.f32.partialorder %v1538_v22, 0.0  ;;  %v1379_v19 = vpop.f32.mrf.mxu3 }
 0x194   :  { %v1380_v18 = vadd.f32 %v1379_v19, %v1359_v3 }
 0x197   :  { %v1440_v49 = vpop.trf.xlu1 }
 0x198   :  { %v1521_v61 = vperm.slane %v1440_v49, 0 }
 0x19a   :  { %v3669_v39 = vmul.f32 %v1521_v61, %v1389_v41 }
 0x19b   :  { %1495 = vxpose.xlu0.b32.cont [8/16] (narrow) %v1139_v45, 8  ;;  %v1203_v45 = vmul.f32 0.5, %v1202_v46 }
 0x19c   :  { %v1529_v20 = vmul.f32 %v3669_v39, %v3669_v39  ;;  %v1602_v56 = vrot.slane %v3669_v39, 4 }
 0x19d   :  { %v1204_v11 = vsub.f32 1.5, %v1203_v45  ;;  %v2102_v45 = vmov 8.0  }
 0x19e   :  { %v1533_v27 = vsub.f32 1.0, %v1529_v20 }
 0x19f   :  { %v1205_v2 = vmul.f32 %v1978_v30, %v1204_v11 }
 0x1a0   :  { %v1537_v1 = vmax.f32 %v1533_v27, 0.0 }
 0x1a1   :  { %v1209_v5 = vsel %vm1208_vm12, %v1978_v30, %v1205_v2 }
 0x1a2   :  { %1981 = vrsqrt.f32 %v1537_v1  ;;  %vm1559_vm0 = vcmp.eq.f32.partialorder %v1537_v1, inf  ;;  %v1562_v57 = vand.u32 2147483648, %v1537_v1  ;;  %vm1561_vm4 = vcmp.eq.f32.partialorder %v1537_v1, 0.0 }
 0x1a3   :  { %1496 = vxpose.xlu0.b32.cont [9/16] (narrow) %v1149_v54, 8  ;;  %v1199_v54 = vsel %vm1198_vm9, %v1976_v35, %v1195_v40  ;;  %1983 = vrsqrt.f32 %v1536_v48 }
 0x1a4   :  { %1985 = vrsqrt.f32 %v1538_v22 }
 0x1a5   :  { %1987 = vrcp.f32 %v2102_v45 }
 0x1a8   :  { %v1982_v60 = vpop.eup %1981 }
 0x1a9   :  { %v1984_v47 = vpop.eup %1983  ;;  %v1553_v35 = vmul.f32 %v1982_v60, %v1537_v1 }
 0x1aa   :  { %v1541_v4 = vmul.f32 %v1984_v47, %v1536_v48 }
 0x1ab   :  { %1497 = vxpose.xlu0.b32.cont [10/16] (narrow) %v1159_v63, 8  ;;  %v1214_v63 = vsub.f32 1.5, %v1213_v55  ;;  %v1554_v32 = vmul.f32 %v1982_v60, %v1553_v35  ;;  %v1391_v55 = vmul.f32 %v3657_v38, %v1380_v18 }
 0x1ac   :  { %v1542_v6 = vmul.f32 %v1984_v47, %v1541_v4 }
 0x1ad   :  { %v1215_v25 = vmul.f32 %v1980_v29, %v1214_v63  ;;  %v1555_v59 = vmul.f32 0.5, %v1554_v32 }
 0x1ae   :  { %v1543_v51 = vmul.f32 0.5, %v1542_v6 }
 0x1af   :  { %v1219_v43 = vsel %vm1218_vm15, %v1980_v29, %v1215_v25  ;;  %v1556_v28 = vsub.f32 1.5, %v1555_v59 }
 0x1b1   :  { %v1557_v14 = vmul.f32 %v1982_v60, %v1556_v28 }
 0x1b3   :  { %1498 = vxpose.xlu0.b32.cont [11/16] (narrow) %v1169_v33, 8  ;;  %v1986_v33 = vpop.eup %1985  ;;  %v1558_v58 = vmul.f32 %v1557_v14, %v1537_v1 }
 0x1b4   :  { %v1565_v31 = vmul.f32 %v1986_v33, %v1538_v22  ;;  %v1988_v2 = vpop.eup %1987 }
 0x1b5   :  { %v1560_v42 = vsel %vm1559_vm0, %v1537_v1, %v1558_v58  ;;  %v1603_v1 = vadd.f32 %v1602_v56, %v3669_v39  ;;  %vm1625_vm7 = vweird.f32 %v1988_v2 }
 0x1b6   :  { %v1566_v15 = vmul.f32 %v1986_v33, %v1565_v31  ;;  %v1563_v24 = vsel %vm1561_vm4, %v1562_v57, %v1560_v42 }
 0x1b7   :  { %v1589_v61 = vmax.f32 %v1563_v24, 1e-06 }
 0x1b8   :  { %v1567_v12 = vmul.f32 0.5, %v1566_v15 }
 0x1b9   :  { %v1593_v41 = vmin.f32 %v1589_v61, 1.0 }
 0x1ba   :  { %v1568_v30 = vsub.f32 1.5, %v1567_v12 }
 0x1bb   :  { %1499 = vxpose.xlu0.b32.cont [12/16] (narrow) %v1179_v8, 8  ;;  %v1544_v8 = vsub.f32 1.5, %v1543_v51  ;;  %v1637_v40 = vrot.slane %v1593_v41, 4 }
 0x1bc   :  { %v1569_v10 = vmul.f32 %v1986_v33, %v1568_v30  ;;  %v1604_v33 = vrot.slane %v1603_v1, 2 }
 0x1bd   :  { %v1545_v9 = vmul.f32 %v1984_v47, %v1544_v8  ;;  %v1638_v13 = vadd.f32 %v1637_v40, %v1593_v41 }
 0x1be   :  { %1849 = vset.pattern.permute.xlu1 %v3874_v36  ;;  %v1570_v23 = vmul.f32 %v1569_v10, %v1538_v22  ;;  %v1605_v51 = vadd.f32 %v1604_v33, %v1603_v1 }
 0x1bf   :  { %v1546_v62 = vmul.f32 %v1545_v9, %v1536_v48  ;;  %v1639_v60 = vrot.slane %v1638_v13, 2 }
 0x1c0   :  { %v1572_v34 = vsel %vm1571_vm3, %v1538_v22, %v1570_v23  ;;  %v1609_v22 = vadd.f32 %v1608_v26, %v3673_v0  ;;  %v1606_v10 = vrot.slane %v1605_v51, 1 }
 0x1c1   :  { %v1548_v49 = vsel %vm1547_vm2, %v1536_v48, %v1546_v62  ;;  %v1575_v46 = vsel %vm1573_vm6, %v1574_v17, %v1572_v34  ;;  %v1597_v48 = vadd.f32 %v1596_v50, %v3671_v52  ;;  %v1640_v15 = vadd.f32 %v1639_v60, %v1638_v13 }
 0x1c2   :  { %v1551_v16 = vsel %vm1549_vm5, %v1550_v37, %v1548_v49  ;;  %v1590_v29 = vmax.f32 %v1575_v46, 1e-06  ;;  %v1610_v31 = vrot.slane %v1609_v22, 2  ;;  %v1607_v17 = vadd.f32 %v1606_v10, %v1605_v51 }
 0x1c3   :  { %1500 = vxpose.xlu0.b32.cont [13/16] (narrow) %v1189_v44, 8  ;;  %v1588_v44 = vmax.f32 %v1551_v16, 1e-06  ;;  %v1598_v4 = vrot.slane %v1597_v48, 2  ;;  %v1641_v14 = vrot.slane %v1640_v15, 1 }
 0x1c4   :  { %v1594_v53 = vmin.f32 %v1590_v29, 1.0  ;;  %v1611_v8 = vadd.f32 %v1610_v31, %v1609_v22 }
 0x1c5   :  { %v1592_v21 = vmin.f32 %v1588_v44, 1.0  ;;  %v1599_v28 = vadd.f32 %v1598_v4, %v1597_v48  ;;  %v1642_v37 = vadd.f32 %v1641_v14, %v1640_v15 }
 0x1c6   :  { %v1612_v42 = vrot.slane %v1611_v8, 1 }
 0x1c7   :  { %v1631_v11 = vrot.slane %v1592_v21, 4  ;;  %v1600_v23 = vrot.slane %v1599_v28, 1 }
 0x1c8   :  { %v1613_v61 = vadd.f32 %v1612_v42, %v1611_v8 }
 0x1c9   :  { %v1632_v63 = vadd.f32 %v1631_v11, %v1592_v21  ;;  %v1601_v46 = vadd.f32 %v1600_v23, %v1599_v28 }
 0x1cb   :  { %1501 = vxpose.xlu0.b32.cont [14/16] (narrow) %v1199_v54, 8  ;;  %v1643_v54 = vrot.slane %v1594_v53, 4  ;;  %v1633_v38 = vrot.slane %v1632_v63, 2 }
 0x1cd   :  { %v1634_v59 = vadd.f32 %v1633_v38, %v1632_v63 }
 0x1cf   :  { %v1635_v9 = vrot.slane %v1634_v59, 1 }
 0x1d1   :  { %v1636_v34 = vadd.f32 %v1635_v9, %v1634_v59 }
 0x1d3   :  { %1502 = vxpose.xlu0.b32.cont [15/16] (narrow) %v1209_v5, 8  ;;  %v1644_v5 = vadd.f32 %v1643_v54, %v1594_v53 }
 0x1d5   :  { %v1645_v35 = vrot.slane %v1644_v5, 2 }
 0x1d7   :  { %v1646_v12 = vadd.f32 %v1645_v35, %v1644_v5 }
 0x1d9   :  { %v1647_v58 = vrot.slane %v1646_v12, 1 }
 0x1db   :  { %1503 = vxpose.xlu0.b32.end [16/16] (narrow) %v1219_v43, 8  ;;  %v1621_v43 = vmul.f32 8.0, %v1988_v2  ;;  %v1648_v16 = vadd.f32 %v1647_v58, %v1646_v12 }
 0x1dd   :  { %v1622_v6 = vsub.f32 1.0, %v1621_v43 }
 0x1df   :  { %v1623_v30 = vmul.f32 %v1988_v2, %v1622_v6 }
 0x1e1   :  { %v1624_v49 = vadd.f32 %v1988_v2, %v1623_v30 }
 0x1e3   :  { %v1626_v44 = vsel %vm1625_vm7, %v1988_v2, %v1624_v49 }
 0x1e4   :  { %v1656_v19 = vmul.f32 %v1642_v37, %v1626_v44  ;;  %v1655_v41 = vmul.f32 %v1636_v34, %v1626_v44  ;;  %v3695_v53 = vmul.f32 %v1626_v44, %v1607_v17  ;;  %v1657_v45 = vmul.f32 %v1648_v16, %v1626_v44 }
 0x1e5   :  { %v3697_v18 = vmul.f32 %v1626_v44, %v1601_v46  ;;  %v3699_v40 = vmul.f32 %v1626_v44, %v1613_v61 }
 0x1e6   :  { %v1663_v54 = vmul.f32 %v1655_v41, %v1655_v41  ;;  %v1660_v26 = vmul.f32 %v3695_v53, %v3695_v53 }
 0x1e7   :  { %v1659_v2 = vmul.f32 %v3697_v18, %v3697_v18  ;;  %v1661_v13 = vmul.f32 %v3699_v40, %v3699_v40 }
 0x1e9   :  { %v1667_v22 = vadd.f32 %v1663_v54, %v1659_v2 }
 0x1eb   :  { %vm1677_vm14 = vweird.f32 %v1667_v22 }
 0x207   :  { %v1504_v20 = vpop.trf.xlu0 }
 0x208   :  { %v1523_v27 = vperm.slane %v1504_v20, 0  ;;  %v1664_v20 = vmul.f32 %v1656_v19, %v1656_v19 }
 0x20a   :  { %v3687_v7 = vmul.f32 %v1523_v27, %v1391_v55  ;;  %v1665_v55 = vmul.f32 %v1657_v45, %v1657_v45  ;;  %v1668_v5 = vadd.f32 %v1664_v20, %v1660_v26 }
 0x20c   :  { %v1531_v25 = vmul.f32 %v3687_v7, %v3687_v7  ;;  %v1614_v3 = vrot.slane %v3687_v7, 4  ;;  %v1669_v43 = vadd.f32 %v1665_v55, %v1661_v13  ;;  %vm1687_vm13 = vweird.f32 %v1668_v5 }
 0x20e   :  { %v1535_v47 = vsub.f32 1.0, %v1531_v25  ;;  %v1615_v11 = vadd.f32 %v1614_v3, %v3687_v7  ;;  %vm1697_vm2 = vweird.f32 %v1669_v43 }
 0x210   :  { %v1539_v32 = vmax.f32 %v1535_v47, 0.0  ;;  %v1616_v63 = vrot.slane %v1615_v11, 2 }
 0x212   :  { %1989 = vrsqrt.f32 %v1539_v32  ;;  %vm1583_vm8 = vcmp.eq.f32.partialorder %v1539_v32, inf  ;;  %v1586_v27 = vand.u32 2147483648, %v1539_v32  ;;  %vm1585_vm9 = vcmp.eq.f32.partialorder %v1539_v32, 0.0 }
 0x213   :  { %v1617_v60 = vadd.f32 %v1616_v63, %v1615_v11  ;;  %1991 = vrsqrt.f32 %v1668_v5 }
 0x214   :  { %1993 = vrsqrt.f32 %v1667_v22 }
 0x215   :  { %1995 = vrsqrt.f32 %v1669_v43  ;;  %v1618_v33 = vrot.slane %v1617_v60, 1 }
 0x217   :  { %v1619_v59 = vadd.f32 %v1618_v33, %v1617_v60 }
 0x218   :  { %v1990_v62 = vpop.eup %1989 }
 0x219   :  { %v1577_v57 = vmul.f32 %v1990_v62, %v1539_v32  ;;  %v1992_v4 = vpop.eup %1991  ;;  %v1630_v30 = vmul.f32 %v1626_v44, %v1619_v59 }
 0x21a   :  { %v1994_v6 = vpop.eup %1993  ;;  %vm1688_vm10 = vweird.f32 %v1992_v4 }
 0x21b   :  { %v1578_v24 = vmul.f32 %v1990_v62, %v1577_v57  ;;  %v1996_v15 = vpop.eup %1995  ;;  %v1672_v28 = vmul.f32 %v1994_v6, %v1667_v22  ;;  %v1662_v23 = vmul.f32 %v1630_v30, %v1630_v30  ;;  %v2103_v57 = vmov -inf   ;;  %vm1689_vm15 = vmor %vm1687_vm13, %vm1688_vm10 }
 0x21c   :  { %v1692_v8 = vmul.f32 %v1996_v15, %v1669_v43  ;;  %66 = vst.msk [vmem:[#allocation4] sm:$0xff] %vm64_vm1, %v2103_v57  ;;  %vm1678_vm11 = vweird.f32 %v1994_v6  ;;  %vm1698_vm12 = vweird.f32 %v1996_v15  ;;  %v2104_v43 = vmov 0.0  }
 0x21d   :  { %v1579_v29 = vmul.f32 0.5, %v1578_v24  ;;  %v1673_v58 = vmul.f32 %v1994_v6, %v1672_v28  ;;  %vm1679_vm0 = vmor %vm1677_vm14, %vm1678_vm11  ;;  %67 = vst.msk [vmem:[#allocation5] sm:$0xff] %vm64_vm1, %v2104_v43 }
 0x21e   :  { %vm1699_vm3 = vmor %vm1697_vm2, %vm1698_vm12 }
 0x21f   :  { %v1580_v21 = vsub.f32 1.5, %v1579_v29  ;;  %v1674_v34 = vmul.f32 0.5, %v1673_v58 }
 0x221   :  { %v1581_v56 = vmul.f32 %v1990_v62, %v1580_v21  ;;  %v1693_v62 = vmul.f32 %v1996_v15, %v1692_v8  ;;  %v1675_v16 = vsub.f32 1.5, %v1674_v34 }
 0x223   :  { %v1582_v50 = vmul.f32 %v1581_v56, %v1539_v32  ;;  %v1694_v24 = vmul.f32 0.5, %v1693_v62  ;;  %v1676_v29 = vmul.f32 %v1994_v6, %v1675_v16 }
 0x224   :  { %v1737_v58 = vld [vmem:[#allocation5] sm:$0xff] }
 0x225   :  { %v1584_v1 = vsel %vm1583_vm8, %v1539_v32, %v1582_v50  ;;  %v1682_v32 = vmul.f32 %v1992_v4, %v1668_v5  ;;  %v1695_v46 = vsub.f32 1.5, %v1694_v24  ;;  %v1680_v45 = vsel %vm1679_vm0, %v1994_v6, %v1676_v29 }
 0x226   :  { %v1587_v48 = vsel %vm1585_vm9, %v1586_v27, %v1584_v1  ;;  %v1711_v54 = vmul.f32 %v1680_v45, %v3697_v18 }
 0x227   :  { %v1591_v25 = vmax.f32 %v1587_v48, 1e-06  ;;  %v1683_v9 = vmul.f32 %v1992_v4, %v1682_v32  ;;  %v1696_v3 = vmul.f32 %v1996_v15, %v1695_v46 }
 0x228   :  { %v1715_v13 = vmul.f32 2.516982, %v1711_v54 }
 0x229   :  { %v1595_v47 = vmin.f32 %v1591_v25, 1.0  ;;  %v1684_v49 = vmul.f32 0.5, %v1683_v9  ;;  %v1700_v11 = vsel %vm1699_vm3, %v1996_v15, %v1696_v3 }
 0x22a   :  { %v1713_v50 = vmul.f32 %v1700_v11, %v3699_v40 }
 0x22b   :  { %v1649_v38 = vrot.slane %v1595_v47, 4  ;;  %v1685_v17 = vsub.f32 1.5, %v1684_v49 }
 0x22c   :  { %v1717_v63 = vmul.f32 2.516982, %v1713_v50 }
 0x22d   :  { %v1650_v35 = vadd.f32 %v1649_v38, %v1595_v47  ;;  %v1686_v61 = vmul.f32 %v1992_v4, %v1685_v17 }
 0x22e   :  { %v3720_v48 = vmul.f32 %v1717_v63, %v3673_v0 }
 0x22f   :  { %v1651_v31 = vrot.slane %v1650_v35, 2  ;;  %v1690_v41 = vsel %vm1689_vm15, %v1992_v4, %v1686_v61 }
 0x230   :  { %v1712_v20 = vmul.f32 %v1690_v41, %v3695_v53  ;;  %v3717_v53 = vmul.f32 %v1715_v13, %v3671_v52 }
 0x231   :  { %v1652_v51 = vadd.f32 %v1651_v31, %v1650_v35 }
 0x232   :  { %v1716_v55 = vmul.f32 2.516982, %v1712_v20 }
 0x233   :  { %v1653_v12 = vrot.slane %v1652_v51, 1 }
 0x234   :  { %v3714_v5 = vmul.f32 %v1716_v55, %v3669_v39  ;;  %v1735_v39 = vld [vmem:[#allocation4] sm:$0xff] }
 0x235   :  { %v1654_v14 = vadd.f32 %v1653_v12, %v1652_v51 }
 0x236   :  { %v1730_v40 = vmax.f32 %v3717_v53, %v3714_v5 }
 0x237   :  { %v1658_v10 = vmul.f32 %v1654_v14, %v1626_v44 }
 0x239   :  { %v1666_v42 = vmul.f32 %v1658_v10, %v1658_v10 }
 0x23b   :  { %v1670_v37 = vadd.f32 %v1666_v42, %v1662_v23 }
 0x23d   :  { %1997 = vrsqrt.f32 %v1670_v37  ;;  %vm1707_vm5 = vweird.f32 %v1670_v37 }
 0x242   :  { %1850 = vset.pattern.permute.xlu0 %v3874_v36 }
 0x243   :  { %v1998_v44 = vpop.eup %1997 }
 0x244   :  { %v1702_v19 = vmul.f32 %v1998_v44, %v1670_v37  ;;  %vm1708_vm4 = vweird.f32 %v1998_v44 }
 0x245   :  { %vm1709_vm6 = vmor %vm1707_vm5, %vm1708_vm4 }
 0x246   :  { %v1703_v21 = vmul.f32 %v1998_v44, %v1702_v19 }
 0x248   :  { %v1704_v56 = vmul.f32 0.5, %v1703_v21 }
 0x24a   :  { %v1705_v36 = vsub.f32 1.5, %v1704_v56 }
 0x24c   :  { %v1706_v26 = vmul.f32 %v1998_v44, %v1705_v36 }
 0x24e   :  { %v1710_v27 = vsel %vm1709_vm6, %v1998_v44, %v1706_v26 }
 0x24f   :  { %v1714_v2 = vmul.f32 %v1710_v27, %v1630_v30 }
 0x251   :  { %v1718_v1 = vmul.f32 2.516982, %v1714_v2 }
 0x253   :  { %v3723_v18 = vmul.f32 %v1718_v1, %v3687_v7 }
 0x255   :  { %v1731_v22 = vmax.f32 %v3720_v48, %v3723_v18 }
 0x257   :  { %v1732_v25 = vmax.f32 %v1730_v40, %v1731_v22 }
 0x259   :  { %1733 = vmax.xlane.f32.xlu2 %v1732_v25 }
 0x2cc   :  { %v1734_v52 = vpop.xlane.xlu2 %1733 }
 0x2cd   :  { %v1736_v60 = vmax.f32 %v1735_v39, %v1734_v52 }
 0x2cf   :  { %v1738_v47 = vsub.f32 %v1735_v39, %v1736_v60  ;;  %1767 = vst.msk [vmem:[#allocation4] sm:$0xff] %vm64_vm1, %v1736_v60  ;;  %1744 = vperm.xlu1 %1849, %v1736_v60  }
 0x2d1   :  { %v1739_v9 = vmul.f32 1.442695, %v1738_v47 }
 0x2d6   :  { %v1786_v0 = vld [vmem:[#allocation4] sm:$0xff] }
 0x2d7   :  { %1793 = vperm.xlu2 %1848, %v1786_v0  }
 0x331   :  { %v1794_v3 = vpop.permute.xlu2 %1793 }
 0x332   :  { %v1796_v19 = vsub.f32 %v3717_v53, %v1794_v3  ;;  %v1797_v41 = vsub.f32 %v3714_v5, %v1794_v3  ;;  %v1798_v21 = vsub.f32 %v3720_v48, %v1794_v3  ;;  %v1799_v45 = vsub.f32 %v3723_v18, %v1794_v3 }
 0x334   :  { %v1800_v11 = vmul.f32 1.442695, %v1796_v19  ;;  %v1802_v56 = vmul.f32 1.442695, %v1797_v41  ;;  %v1804_v20 = vmul.f32 1.442695, %v1798_v21 }
 0x335   :  { %v1806_v36 = vmul.f32 1.442695, %v1799_v45 }
 0x341   :  { %v1745_v7 = vpop.permute.xlu1 %1744 }
 0x342   :  { %v1747_v38 = vsub.f32 %v3717_v53, %v1745_v7  ;;  %v1748_v33 = vsub.f32 %v3714_v5, %v1745_v7  ;;  %v1749_v35 = vsub.f32 %v3720_v48, %v1745_v7  ;;  %v1750_v4 = vsub.f32 %v3723_v18, %v1745_v7 }
 0x344   :  { %v1751_v31 = vmul.f32 1.442695, %v1747_v38  ;;  %v1753_v6 = vmul.f32 1.442695, %v1748_v33  ;;  %v1755_v15 = vmul.f32 1.442695, %v1749_v35 }
 0x345   :  { %v1757_v59 = vmul.f32 1.442695, %v1750_v4 }
 0x346   :  { %1999 = vpow2.f32 %v1751_v31 }
 0x347   :  { %2001 = vpow2.f32 %v1753_v6 }
 0x348   :  { %2003 = vpow2.f32 %v1755_v15 }
 0x349   :  { %2005 = vpow2.f32 %v1757_v59 }
 0x34a   :  { %2007 = vpow2.f32 %v1739_v9 }
 0x34c   :  { %v2000_v51 = vpop.eup %1999 }
 0x34d   :  { %v2002_v32 = vpop.eup %2001 }
 0x34e   :  { %v1759_v12 = vadd.f32 %v2002_v32, %v2000_v51  ;;  %v2004_v28 = vpop.eup %2003 }
 0x34f   :  { %v2006_v30 = vpop.eup %2005 }
 0x350   :  { %v1760_v8 = vadd.f32 %v2004_v28, %v1759_v12  ;;  %v2008_v10 = vpop.eup %2007 }
 0x351   :  { %v1741_v62 = vmul.f32 %v2008_v10, %v1737_v58 }
 0x352   :  { %v1761_v14 = vadd.f32 %v2006_v30, %v1760_v8 }
 0x354   :  { %1762 = vadd.xlane.f32.xlu1 %v1761_v14 }
 0x3c7   :  { %v1763_v23 = vpop.xlane.xlu1 %1762 }
 0x3c8   :  { %v1764_v42 = vadd.f32 %v1763_v23, %v1741_v62 }
 0x3ca   :  { %1766 = vst.msk [vmem:[#allocation5] sm:$0xff] %vm64_vm1, %v1764_v42 }
 0x3d1   :  { %v1771_v49 = vld [vmem:[#allocation5] sm:$0xff] }
 0x3d2   :  { %2009 = vrcp.f32 %v1771_v49  ;;  %v1783_v24 = vand.u32 2147483648, %v1771_v49  ;;  %v1781_v16 = vand.u32 2147483647, %v1771_v49  ;;  %vm1777_vm8 = vweird.f32 %v1771_v49 }
 0x3d3   :  { %2011 = vpow2.f32 %v1800_v11 }
 0x3d4   :  { %v1784_v61 = vor.u32 1.1754944e-38, %v1783_v24  ;;  %vm1782_vm10 = vcmp.eq.f32.partialorder %v1781_v16, 8.507059e+37  ;;  %2013 = vpow2.f32 %v1802_v56 }
 0x3d5   :  { %2015 = vpow2.f32 %v1804_v20 }
 0x3d6   :  { %2017 = vpow2.f32 %v1806_v36 }
 0x3d8   :  { %v2010_v57 = vpop.eup %2009 }
 0x3d9   :  { %v1773_v37 = vmul.f32 %v2010_v57, %v1771_v49  ;;  %vm1778_vm7 = vweird.f32 %v2010_v57  ;;  %v2012_v54 = vpop.eup %2011 }
 0x3da   :  { %vm1779_vm9 = vmor %vm1777_vm8, %vm1778_vm7  ;;  %v2014_v50 = vpop.eup %2013 }
 0x3db   :  { %v1774_v34 = vsub.f32 1.0, %v1773_v37  ;;  %v2016_v26 = vpop.eup %2015 }
 0x3dc   :  { %v2018_v27 = vpop.eup %2017 }
 0x3dd   :  { %v1775_v17 = vmul.f32 %v2010_v57, %v1774_v34 }
 0x3df   :  { %v1776_v46 = vadd.f32 %v2010_v57, %v1775_v17 }
 0x3e1   :  { %v1780_v44 = vsel %vm1779_vm9, %v2010_v57, %v1776_v46 }
 0x3e2   :  { %v1785_v29 = vsel %vm1782_vm10, %v1784_v61, %v1780_v44 }
 0x3e3   :  { %1810 = vperm.xlu0 %1850, %v1785_v29  }
 0x455   :  { %v1811_v55 = vpop.permute.xlu0 %1810 }
 0x456   :  { %v1813_v2 = vmul.f32 %v2012_v54, %v1811_v55  ;;  %v1814_v13 = vmul.f32 %v2014_v50, %v1811_v55  ;;  %v1815_v63 = vmul.f32 %v2016_v26, %v1811_v55  ;;  %v1816_v1 = vmul.f32 %v2018_v27, %v1811_v55 }
 0x458   :  { %1817 = vst [vmem:[#allocation11] sm:$0xff] %v1813_v2 }
 0x459   :  { %1818 = vst [vmem:[#allocation11 + $0x8] sm:$0xff] %v1814_v13 }
 0x45a   :  { %1819 = vst [vmem:[#allocation11 + $0x10] sm:$0xff] %v1815_v63 }
 0x45b   :  { %1820 = vst [vmem:[#allocation11 + $0x18] sm:$0xff] %v1816_v1 }
 0x45c   :  { %1831 = dma.vmem_to_hbm [thread:$0]  %s1827_s1, 512, %s1829_s23, [#allocation8]  }
 0x45d   :  { %2095 = dma.done.wait [#allocation8], 512  }
 0x45e   :  { %2096 = vsyncadd [#allocation8], 4294966784 }
 0x45f   :  { %1836 = vsyncpa [#allocation7], 1 }
 0x460   :  { %1837 = vsyncpa [#allocation10], 1 }
 0x461   :  { %1838 = vsyncpa [#allocation8], 1 }

</bundles_post_ra>
